<compile_context>
chip_gen: v5e
topology: v5e:2x2
jax: 0.10.0
libtpu: 0.0.40
codegen_flags: <defaults>
</compile_context>

<pallas_src>
import jax
import jax.numpy as jnp
from jax import lax
from jax.experimental import pallas as pl
from jax.experimental.pallas import tpu as pltpu

BN_EPS = 1e-5


def _round_up(n, m):
    return ((n + m - 1) // m) * m


def _vmem_limit_bytes():
    """Generation-aware scoped-VMEM limit (v5e/v6e: 128 MiB physical, v7x: 64 MiB)."""
    phys = 64 * 1024 * 1024
    try:
        info = pltpu.get_tpu_info()
        phys = int(getattr(info, "vmem_capacity_bytes", phys))
    except Exception:
        pass
    if phys >= 128 * 1024 * 1024:
        return 96 * 1024 * 1024      # v5e / v6e
    return 32 * 1024 * 1024          # v7x (64 MiB physical): stay at half


def lmdecoder_kernel(x_ref, w1_ref, w2_ref, bn_ref, w3_ref, b3_ref, o_ref, h_ref):
    """Grid: (outp // tn,) over the fc3 / output N dimension.

    x/w1/w2/bn_ref have constant index_maps (VMEM-resident, fetched once);
    w3/b3/o are N-tiles (double-buffered by the Pallas pipeline).
    bn_ref rows: 0=gamma1, 1=beta1, 2=gamma2, 3=beta2.
    """

    @pl.when(pl.program_id(0) == 0)
    def _():
        inv_b = 1.0 / x_ref.shape[0]

        # ---- fc1 (bias dropped: cancelled exactly by BN mean subtraction) ----
        x = x_ref[...].astype(jnp.bfloat16)
        h = jnp.dot(x, w1_ref[...], preferred_element_type=jnp.float32)   # (B, 256)

        # ---- bn1 (training-mode batch stats, one pass), folded scale/shift, relu
        mean = jnp.sum(h, axis=0, keepdims=True) * inv_b
        ex2 = jnp.sum(h * h, axis=0, keepdims=True) * inv_b
        var = jnp.maximum(ex2 - mean * mean, 0.0)   # clamp: cancellation can go < 0
        scale = bn_ref[0:1, :] * lax.rsqrt(var + BN_EPS)
        shift = bn_ref[1:2, :] - mean * scale
        h = jnp.maximum(h * scale + shift, 0.0)

        # ---- fc2 (bias dropped) -> bn2 -> relu ----
        h = jnp.dot(h.astype(jnp.bfloat16), w2_ref[...],
                    preferred_element_type=jnp.float32)                   # (B, 256)
        mean = jnp.sum(h, axis=0, keepdims=True) * inv_b
        ex2 = jnp.sum(h * h, axis=0, keepdims=True) * inv_b
        var = jnp.maximum(ex2 - mean * mean, 0.0)
        scale = bn_ref[2:3, :] * lax.rsqrt(var + BN_EPS)
        shift = bn_ref[3:4, :] - mean * scale
        h_ref[...] = jnp.maximum(h * scale + shift, 0.0).astype(jnp.bfloat16)

    # ---- fc3 N-tile (lane-dense) + bias ----
    out = jnp.dot(h_ref[...], w3_ref[...], preferred_element_type=jnp.float32)
    o_ref[...] = out + b3_ref[...]


def lmdecoder_forward(x, params, num_points):
    """x: (B, 512) float32 -> (B, num_points, 3) float32.  Training-mode BN."""
    B = x.shape[0]
    out_dim = num_points * 3
    w1, w2, w3 = params["w1"], params["w2"], params["w3"]
    bn_vec, b3p = params["bn_vec"], params["b3_pad"]
    outp = w3.shape[1]                   # lane-padded fc3 width (multiple of 128)

    # fc3 N-tile size (outp is a multiple of 128, so one of these always divides).
    tn = 512 if outp % 512 == 0 else (256 if outp % 256 == 0 else 128)
    grid = (outp // tn,)

    # ---- VMEM budget guard (B is now the only dimension that can blow it up) ----
    vmem_limit = _vmem_limit_bytes()
    fixed_bytes = B * 512 * 4 + w1.size * 2 + w2.size * 2 + bn_vec.size * 4
    tile_bytes = 256 * tn * 2 + tn * 4 + B * tn * 4       # w3 tile, b3 tile, out tile
    scratch_bytes = B * 256 * 2
    est_vmem = 2 * (fixed_bytes + tile_bytes) + scratch_bytes   # 2x: pipeline buffers
    if est_vmem > vmem_limit - (2 << 20):
        # TODO(synk): batch-tiled two-pass-BN path (stats kernel + apply kernel,
        # B axis "parallel" for v7x megacore); padded rows must be masked out of
        # the BN statistics and inv_b must use the true B, not the padded shape.
        raise NotImplementedError("batch too large for batch-resident kernel")

    cost = pl.CostEstimate(
        flops=2 * B * (512 * 256 + 256 * 256 + 256 * outp),
        transcendentals=2 * 256,
        bytes_accessed=int(x.size * 4 + w1.size * 2 + w2.size * 2 + w3.size * 2
                           + bn_vec.size * 4 + b3p.size * 4 + B * outp * 4),
    )

    out = pl.pallas_call(
        lmdecoder_kernel,
        out_shape=jax.ShapeDtypeStruct((B, outp), jnp.float32),
        grid_spec=pltpu.PrefetchScalarGridSpec(
            num_scalar_prefetch=0,
            grid=grid,
            in_specs=[
                pl.BlockSpec((B, 512), lambda j: (0, 0)),      # x       (resident)
                pl.BlockSpec((512, 256), lambda j: (0, 0)),    # w1      (resident)
                pl.BlockSpec((256, 256), lambda j: (0, 0)),    # w2      (resident)
                pl.BlockSpec((4, 256), lambda j: (0, 0)),      # BN vec  (resident)
                pl.BlockSpec((256, tn), lambda j: (0, j)),     # w3 N-tile
                pl.BlockSpec((1, tn), lambda j: (0, j)),       # b3 N-tile
            ],
            out_specs=pl.BlockSpec((B, tn), lambda j: (0, j)),
            scratch_shapes=[pltpu.VMEM((B, 256), jnp.bfloat16)],
        ),
        compiler_params=pltpu.CompilerParams(
            dimension_semantics=("arbitrary",),   # fc3 tiles depend on step-0 scratch
            vmem_limit_bytes=vmem_limit,
        ),
        cost_estimate=cost,
    )(x, w1, w2, bn_vec, w3, b3p)

    if outp != out_dim:
        # TODO(synk): let downstream consumers read the lane-padded (B, outp)
        # layout directly to skip this extra HBM read+write of the result.
        out = out[:, :out_dim]
    return out.reshape(B, num_points, 3)


def init_params(key, num_points):
    """Deterministic synthetic params (shapes follow nn.Linear / BatchNorm1d)."""
    out_dim = num_points * 3
    outp = _round_up(out_dim, 128)
    ks = jax.random.split(key, 6)

    def linear(kw, kb, fan_in, fan_out):
        bound = 1.0 / (fan_in ** 0.5)
        w = jax.random.uniform(kw, (fan_in, fan_out), jnp.float32, -bound, bound)
        b = jax.random.uniform(kb, (1, fan_out), jnp.float32, -bound, bound)
        return w, b

    w1, b1 = linear(ks[0], ks[1], 512, 256)
    w2, b2 = linear(ks[2], ks[3], 256, 256)
    w3, b3 = linear(ks[4], ks[5], 256, out_dim)

    g1 = jnp.ones((1, 256), jnp.float32)
    be1 = jnp.zeros((1, 256), jnp.float32)
    g2 = jnp.ones((1, 256), jnp.float32)
    be2 = jnp.zeros((1, 256), jnp.float32)

    # bf16 weights for the kernel MXU path (w3 zero-padded to a lane-dense width).
    w1_bf = w1.astype(jnp.bfloat16)
    w2_bf = w2.astype(jnp.bfloat16)
    w3_bf = jnp.zeros((256, outp), jnp.bfloat16).at[:, :out_dim].set(
        w3.astype(jnp.bfloat16))

    bn_vec = jnp.concatenate([g1, be1, g2, be2], axis=0)            # (4, 256) f32
    b3_pad = jnp.zeros((1, outp), jnp.float32).at[:, :out_dim].set(b3)

    return {
        # kernel params
        "w1": w1_bf, "w2": w2_bf, "w3": w3_bf, "bn_vec": bn_vec, "b3_pad": b3_pad,
        # reference params (b1/b2 kept here: they cancel under BN, kernel drops them)
        "b1": b1, "b2": b2, "b3": b3,
        "g1": g1, "be1": be1, "g2": g2, "be2": be2,
    }


def lmdecoder_reference(x, params, num_points):
    """Pure-JAX reference of the PyTorch forward (BN in training mode) using the
    same bf16 weight/activation quantization policy as the kernel.  It keeps the
    fc1/fc2 biases and the straightforward two-pass BN formula, so it also
    validates the kernel's bias-cancellation and folded one-pass BN."""
    out_dim = num_points * 3

    def dot_bf16(a, w):
        return jnp.dot(a.astype(jnp.bfloat16), w, preferred_element_type=jnp.float32)

    def bn(h, g, be):
        mean = jnp.mean(h, axis=0, keepdims=True)
        var = jnp.mean((h - mean) ** 2, axis=0, keepdims=True)
        return (h - mean) / jnp.sqrt(var + BN_EPS) * g + be

    h = dot_bf16(x, params["w1"]) + params["b1"]
    h = jax.nn.relu(bn(h, params["g1"], params["be1"]))
    h = dot_bf16(h, params["w2"]) + params["b2"]
    h = jax.nn.relu(bn(h, params["g2"], params["be2"]))
    h = dot_bf16(h, params["w3"][:, :out_dim]) + params["b3"]
    return h.reshape(x.shape[0], num_points, 3)


if __name__ == "__main__":
    num_points = 64
    B = 2

    key = jax.random.PRNGKey(0)
    kx, kp = jax.random.split(key)
    x = jax.random.normal(kx, (B, 512), jnp.float32)
    params = init_params(kp, num_points)

    out = jax.block_until_ready(lmdecoder_forward(x, params, num_points))
    ref = lmdecoder_reference(x, params, num_points)

    assert out.shape == (B, num_points, 3)
    # Tolerance covers one-pass-vs-two-pass BN stats and bf16 rounding-order noise.
    assert jnp.allclose(out, ref, atol=2e-3, rtol=2e-3), "mismatch vs reference"

    print("KERNEL_OK")
</pallas_src>

<mosaic_0001>
module attributes {stable_mosaic.version = 11 : i64} {
  func.func @lmdecoder_kernel(%arg0: i32, %arg1: memref<2x512xf32, #tpu.memory_space<vmem>>, %arg2: memref<512x256xbf16, #tpu.memory_space<vmem>>, %arg3: memref<256x256xbf16, #tpu.memory_space<vmem>>, %arg4: memref<4x256xf32, #tpu.memory_space<vmem>>, %arg5: memref<256x256xbf16, #tpu.memory_space<vmem>>, %arg6: memref<1x256xf32, #tpu.memory_space<vmem>>, %arg7: memref<2x256xf32, #tpu.memory_space<vmem>>, %arg8: memref<2x256xbf16, #tpu.memory_space<vmem>>) attributes {dimension_semantics = [#tpu.dimension_semantics<arbitrary>], iteration_bounds = array<i64: 1>, scalar_prefetch = 0 : i64, scratch_operands = 1 : i64, tpu.core_type = #tpu.core_type<tc>, window_params = [{pipeline_mode = #tpu.pipeline_mode<synchronous>, transform_indices = @transform_0, window_bounds = array<i64: 2, 512>}, {pipeline_mode = #tpu.pipeline_mode<synchronous>, transform_indices = @transform_1, window_bounds = array<i64: 512, 256>}, {pipeline_mode = #tpu.pipeline_mode<synchronous>, transform_indices = @transform_2, window_bounds = array<i64: 256, 256>}, {pipeline_mode = #tpu.pipeline_mode<synchronous>, transform_indices = @transform_3, window_bounds = array<i64: 4, 256>}, {transform_indices = @transform_4, window_bounds = array<i64: 256, 256>}, {transform_indices = @transform_5, window_bounds = array<i64: 1, 256>}, {transform_indices = @transform_6, window_bounds = array<i64: 2, 256>}]} {
    %c0_i32 = arith.constant 0 : i32
    %0 = arith.cmpi eq, %arg0, %c0_i32 : i32
    %1 = arith.extui %0 : i1 to i32
    %c0_i32_0 = arith.constant 0 : i32
    %2 = arith.cmpi ne, %1, %c0_i32_0 : i32
    scf.if %2 {
      %c0_8 = arith.constant 0 : index
      %c0_9 = arith.constant 0 : index
      %10 = vector.load %arg1[%c0_8, %c0_9] : memref<2x512xf32, #tpu.memory_space<vmem>>, vector<2x512xf32>
      %11 = arith.truncf %10 : vector<2x512xf32> to vector<2x512xbf16>
      %c0_10 = arith.constant 0 : index
      %c0_11 = arith.constant 0 : index
      %12 = vector.load %arg2[%c0_10, %c0_11] : memref<512x256xbf16, #tpu.memory_space<vmem>>, vector<512x256xbf16>
      %cst_12 = arith.constant dense<0.000000e+00> : vector<2x256xf32>
      %13 = tpu.matmul %11, %12, %cst_12 {dimension_numbers = #tpu.dot_dimension_numbers<[1], [0], [0], [1], [0, 0, 1, 1], [], []>} : vector<2x512xbf16>, vector<512x256xbf16>, vector<2x256xf32> -> vector<2x256xf32>
      %cst_13 = arith.constant dense<0.000000e+00> : vector<256xf32>
      %14 = vector.multi_reduction <add>, %13, %cst_13 [0] : vector<2x256xf32> to vector<256xf32>
      %15 = vector.shape_cast %14 : vector<256xf32> to vector<1x256xf32>
      %cst_14 = arith.constant 5.000000e-01 : f32
      %16 = vector.broadcast %cst_14 : f32 to vector<1x256xf32>
      %17 = arith.mulf %15, %16 : vector<1x256xf32>
      %18 = arith.mulf %13, %13 : vector<2x256xf32>
      %cst_15 = arith.constant dense<0.000000e+00> : vector<256xf32>
      %19 = vector.multi_reduction <add>, %18, %cst_15 [0] : vector<2x256xf32> to vector<256xf32>
      %20 = vector.shape_cast %19 : vector<256xf32> to vector<1x256xf32>
      %cst_16 = arith.constant 5.000000e-01 : f32
      %21 = vector.broadcast %cst_16 : f32 to vector<1x256xf32>
      %22 = arith.mulf %20, %21 : vector<1x256xf32>
      %23 = arith.mulf %17, %17 : vector<1x256xf32>
      %24 = arith.subf %22, %23 : vector<1x256xf32>
      %cst_17 = arith.constant 0.000000e+00 : f32
      %25 = vector.broadcast %cst_17 : f32 to vector<1x256xf32>
      %26 = arith.maximumf %24, %25 : vector<1x256xf32>
      %c0_18 = arith.constant 0 : index
      %c0_19 = arith.constant 0 : index
      %27 = vector.load %arg4[%c0_18, %c0_19] : memref<4x256xf32, #tpu.memory_space<vmem>>, vector<1x256xf32>
      %cst_20 = arith.constant 9.99999974E-6 : f32
      %28 = vector.broadcast %cst_20 : f32 to vector<1x256xf32>
      %29 = arith.addf %26, %28 : vector<1x256xf32>
      %30 = math.rsqrt %29 : vector<1x256xf32>
      %31 = arith.mulf %27, %30 : vector<1x256xf32>
      %c1 = arith.constant 1 : index
      %c0_21 = arith.constant 0 : index
      %32 = vector.load %arg4[%c1, %c0_21] : memref<4x256xf32, #tpu.memory_space<vmem>>, vector<1x256xf32>
      %33 = arith.mulf %17, %31 : vector<1x256xf32>
      %34 = arith.subf %32, %33 : vector<1x256xf32>
      %35 = vector.broadcast %31 : vector<1x256xf32> to vector<2x256xf32>
      %36 = arith.mulf %13, %35 : vector<2x256xf32>
      %37 = vector.broadcast %34 : vector<1x256xf32> to vector<2x256xf32>
      %38 = arith.addf %36, %37 : vector<2x256xf32>
      %cst_22 = arith.constant 0.000000e+00 : f32
      %39 = vector.broadcast %cst_22 : f32 to vector<2x256xf32>
      %40 = arith.maximumf %38, %39 : vector<2x256xf32>
      %41 = arith.truncf %40 : vector<2x256xf32> to vector<2x256xbf16>
      %c0_23 = arith.constant 0 : index
      %c0_24 = arith.constant 0 : index
      %42 = vector.load %arg3[%c0_23, %c0_24] : memref<256x256xbf16, #tpu.memory_space<vmem>>, vector<256x256xbf16>
      %cst_25 = arith.constant dense<0.000000e+00> : vector<2x256xf32>
      %43 = tpu.matmul %41, %42, %cst_25 {dimension_numbers = #tpu.dot_dimension_numbers<[1], [0], [0], [1], [0, 0, 1, 1], [], []>} : vector<2x256xbf16>, vector<256x256xbf16>, vector<2x256xf32> -> vector<2x256xf32>
      %cst_26 = arith.constant dense<0.000000e+00> : vector<256xf32>
      %44 = vector.multi_reduction <add>, %43, %cst_26 [0] : vector<2x256xf32> to vector<256xf32>
      %45 = vector.shape_cast %44 : vector<256xf32> to vector<1x256xf32>
      %cst_27 = arith.constant 5.000000e-01 : f32
      %46 = vector.broadcast %cst_27 : f32 to vector<1x256xf32>
      %47 = arith.mulf %45, %46 : vector<1x256xf32>
      %48 = arith.mulf %43, %43 : vector<2x256xf32>
      %cst_28 = arith.constant dense<0.000000e+00> : vector<256xf32>
      %49 = vector.multi_reduction <add>, %48, %cst_28 [0] : vector<2x256xf32> to vector<256xf32>
      %50 = vector.shape_cast %49 : vector<256xf32> to vector<1x256xf32>
      %cst_29 = arith.constant 5.000000e-01 : f32
      %51 = vector.broadcast %cst_29 : f32 to vector<1x256xf32>
      %52 = arith.mulf %50, %51 : vector<1x256xf32>
      %53 = arith.mulf %47, %47 : vector<1x256xf32>
      %54 = arith.subf %52, %53 : vector<1x256xf32>
      %cst_30 = arith.constant 0.000000e+00 : f32
      %55 = vector.broadcast %cst_30 : f32 to vector<1x256xf32>
      %56 = arith.maximumf %54, %55 : vector<1x256xf32>
      %c2 = arith.constant 2 : index
      %c0_31 = arith.constant 0 : index
      %57 = vector.load %arg4[%c2, %c0_31] : memref<4x256xf32, #tpu.memory_space<vmem>>, vector<1x256xf32>
      %cst_32 = arith.constant 9.99999974E-6 : f32
      %58 = vector.broadcast %cst_32 : f32 to vector<1x256xf32>
      %59 = arith.addf %56, %58 : vector<1x256xf32>
      %60 = math.rsqrt %59 : vector<1x256xf32>
      %61 = arith.mulf %57, %60 : vector<1x256xf32>
      %c3 = arith.constant 3 : index
      %c0_33 = arith.constant 0 : index
      %62 = vector.load %arg4[%c3, %c0_33] : memref<4x256xf32, #tpu.memory_space<vmem>>, vector<1x256xf32>
      %63 = arith.mulf %47, %61 : vector<1x256xf32>
      %64 = arith.subf %62, %63 : vector<1x256xf32>
      %65 = vector.broadcast %61 : vector<1x256xf32> to vector<2x256xf32>
      %66 = arith.mulf %43, %65 : vector<2x256xf32>
      %67 = vector.broadcast %64 : vector<1x256xf32> to vector<2x256xf32>
      %68 = arith.addf %66, %67 : vector<2x256xf32>
      %cst_34 = arith.constant 0.000000e+00 : f32
      %69 = vector.broadcast %cst_34 : f32 to vector<2x256xf32>
      %70 = arith.maximumf %68, %69 : vector<2x256xf32>
      %71 = arith.truncf %70 : vector<2x256xf32> to vector<2x256xbf16>
      %c0_35 = arith.constant 0 : index
      %c0_36 = arith.constant 0 : index
      %72 = vector.load %arg8[%c0_35, %c0_36] : memref<2x256xbf16, #tpu.memory_space<vmem>>, vector<2x256xbf16>
      tpu.vector_store %arg8[%c0_35, %c0_36], %71 {strides = array<i32>} : memref<2x256xbf16, #tpu.memory_space<vmem>>, vector<2x256xbf16>,
    } else {
    }
    %c0 = arith.constant 0 : index
    %c0_1 = arith.constant 0 : index
    %3 = vector.load %arg8[%c0, %c0_1] : memref<2x256xbf16, #tpu.memory_space<vmem>>, vector<2x256xbf16>
    %c0_2 = arith.constant 0 : index
    %c0_3 = arith.constant 0 : index
    %4 = vector.load %arg5[%c0_2, %c0_3] : memref<256x256xbf16, #tpu.memory_space<vmem>>, vector<256x256xbf16>
    %cst = arith.constant dense<0.000000e+00> : vector<2x256xf32>
    %5 = tpu.matmul %3, %4, %cst {dimension_numbers = #tpu.dot_dimension_numbers<[1], [0], [0], [1], [0, 0, 1, 1], [], []>} : vector<2x256xbf16>, vector<256x256xbf16>, vector<2x256xf32> -> vector<2x256xf32>
    %c0_4 = arith.constant 0 : index
    %c0_5 = arith.constant 0 : index
    %6 = vector.load %arg6[%c0_4, %c0_5] : memref<1x256xf32, #tpu.memory_space<vmem>>, vector<1x256xf32>
    %7 = vector.broadcast %6 : vector<1x256xf32> to vector<2x256xf32>
    %8 = arith.addf %5, %7 : vector<2x256xf32>
    %c0_6 = arith.constant 0 : index
    %c0_7 = arith.constant 0 : index
    %9 = vector.load %arg7[%c0_6, %c0_7] : memref<2x256xf32, #tpu.memory_space<vmem>>, vector<2x256xf32>
    tpu.vector_store %arg7[%c0_6, %c0_7], %8 {strides = array<i32>} : memref<2x256xf32, #tpu.memory_space<vmem>>, vector<2x256xf32>,
    return
  }
  func.func @transform_0(%arg0: i32) -> (i32, i32) {
    %c0_i32 = arith.constant 0 : i32
    %c0_i32_0 = arith.constant 0 : i32
    %c0_i32_1 = arith.constant 0 : i32
    return %c0_i32, %c0_i32_0 : i32, i32
  }
  func.func @transform_1(%arg0: i32) -> (i32, i32) {
    %c0_i32 = arith.constant 0 : i32
    %c0_i32_0 = arith.constant 0 : i32
    %c0_i32_1 = arith.constant 0 : i32
    return %c0_i32, %c0_i32_0 : i32, i32
  }
  func.func @transform_2(%arg0: i32) -> (i32, i32) {
    %c0_i32 = arith.constant 0 : i32
    %c0_i32_0 = arith.constant 0 : i32
    %c0_i32_1 = arith.constant 0 : i32
    return %c0_i32, %c0_i32_0 : i32, i32
  }
  func.func @transform_3(%arg0: i32) -> (i32, i32) {
    %c0_i32 = arith.constant 0 : i32
    %c0_i32_0 = arith.constant 0 : i32
    %c0_i32_1 = arith.constant 0 : i32
    return %c0_i32, %c0_i32_0 : i32, i32
  }
  func.func @transform_4(%arg0: i32) -> (i32, i32) {
    %c0_i32 = arith.constant 0 : i32
    %c0_i32_0 = arith.constant 0 : i32
    return %c0_i32, %arg0 : i32, i32
  }
  func.func @transform_5(%arg0: i32) -> (i32, i32) {
    %c0_i32 = arith.constant 0 : i32
    %c0_i32_0 = arith.constant 0 : i32
    return %c0_i32, %arg0 : i32, i32
  }
  func.func @transform_6(%arg0: i32) -> (i32, i32) {
    %c0_i32 = arith.constant 0 : i32
    %c0_i32_0 = arith.constant 0 : i32
    return %c0_i32, %arg0 : i32, i32
  }
}

</mosaic_0001>

<bundles_post_ra>
// kernel: tpu_custom_call.1
= control target key start
LH: loop header
LB: loop body
LE: loop exit
PB: predicated region body
PF: predicated region fallthrough
CT: control target
= control target key end

     0   :  { %11 = vsyncpa [#allocation4], 0  ;;  %s2321_s0 = inlined_call_operand.hbm [shape: f32[2,512], index: 0, kind: input, shape index: {}]   ;;  %s2322_s1 = inlined_call_operand.hbm [shape: bf16[512,256], index: 1, kind: input, shape index: {}]   ;;  %s2323_s2 = inlined_call_operand.hbm [shape: bf16[256,256], index: 2, kind: input, shape index: {}]   ;;  %s2324_s3 = inlined_call_operand.hbm [shape: f32[4,256], index: 3, kind: input, shape index: {}]   ;;  %s2325_s4 = inlined_call_operand.hbm [shape: bf16[256,256], index: 4, kind: input, shape index: {}]   ;;  %s2326_s5 = inlined_call_operand.vmem [shape: f32[1,256], index: 5, kind: input, shape index: {}]   ;;  %s2327_s6 = inlined_call_operand.hbm [shape: f32[2,256], index: 6, kind: output, shape index: {}]  }
   0x1   :  { %12 = vsyncpa [#allocation7], 0 }
   0x2   :  { %13 = vsyncpa [#allocation10], 0  ;;  %s30_s23 = sshll.u32 %s2322_s1, 4  ;;  %s31_s23 = int_to_ptr.hbm [resolvable:$true] %s30_s23 }
   0x3   :  { %14 = vsyncpa [#allocation5], 0  ;;  %s2143_s24 = smov [#allocation6]   ;;  %s57_s28 = sshll.u32 %s2324_s3, 4  ;;  %s58_s28 = int_to_ptr.hbm [resolvable:$true] %s57_s28 }
   0x4   :  { %s32_s25 = sshll.u32 %s2143_s24, 4  ;;  %s2144_s29 = smov 128   ;;  %s33_s25 = int_to_ptr.vmem [resolvable:$true] %s32_s25 }
   0x5   :  { %s2145_s30 = smov 8   ;;  %s2146_s7 = smov [#allocation9]  }
   0x6   :  { %38 = dma.hbm_to_vmem [thread:$0]  %s31_s23, 8192, %s33_s25, [#allocation7], %s2144_s29, %s2144_s29, %s2145_s30  }
   0x7   :  { %s59_s8 = sshll.u32 %s2146_s7, 4  ;;  %s20_s11 = sshll.u32 %s2321_s0, 4  ;;  %s60_s8 = int_to_ptr.vmem [resolvable:$true] %s59_s8  ;;  %s21_s11 = int_to_ptr.hbm [resolvable:$true] %s20_s11 }
   0x8   :  { %62 = dma.hbm_to_vmem [thread:$0]  %s58_s28, 128, %s60_s8, [#allocation10]  }
   0x9   :  { %s43_s13 = sshll.u32 %s2323_s2, 4  ;;  %s2147_s14 = smov [#allocation3]   ;;  %s44_s13 = int_to_ptr.hbm [resolvable:$true] %s43_s13 }
   0xa   :  { %s22_s15 = sshll.u32 %s2147_s14, 4  ;;  %s2148_s3 = smov [#allocation8]   ;;  %s23_s15 = int_to_ptr.vmem [resolvable:$true] %s22_s15 }
   0xb   :  { %25 = dma.hbm_to_vmem [thread:$0]  %s21_s11, 128, %s23_s15, [#allocation4]  }
   0xc   :  { %s45_s16 = sshll.u32 %s2148_s3, 4  ;;  %s67_s19 = sshll.u32 %s2325_s4, 4  ;;  %s46_s16 = int_to_ptr.vmem [resolvable:$true] %s45_s16  ;;  %s68_s19 = int_to_ptr.hbm [resolvable:$true] %s67_s19 }
   0xd   :  { %51 = dma.hbm_to_vmem [thread:$0]  %s44_s13, 4096, %s46_s16, [#allocation7], %s2144_s29, %s2144_s29, %s2145_s30  }
   0xe   :  { %s2149_s0 = smov [#allocation11]  }
   0xf   :  { %s69_s20 = sshll.u32 %s2149_s0, 4  ;;  %s70_s20 = int_to_ptr.vmem [resolvable:$true] %s69_s20 }
  0x10   :  { %75 = dma.hbm_to_vmem [thread:$0]  %s68_s19, 4096, %s70_s20, [#allocation10], %s2144_s29, %s2144_s29, %s2145_s30  }
  0x11   :  { %2135 = dma.done.wait [#allocation4], 128  }
  0x12   :  { %2136 = vsyncadd [#allocation4], 4294967168 }
  0x13   :  { %2137 = dma.done.wait [#allocation7], 12288  }
  0x14   :  { %2138 = vsyncadd [#allocation7], 4294955008 }
  0x15   :  { %2139 = dma.done.wait [#allocation10], 4224  }
  0x16   :  { %2140 = vsyncadd [#allocation10], 4294963072  ;;  %v1393_v0 = vld [vmem:[#allocation6 + $0x70] sm:$0xf]  ;;  %v1862_v1 = vld [vmem:[#allocation6 + $0x74] sm:$0xf0] }
  0x17   :  { %v1457_v2 = vld [vmem:[#allocation6 + $0xf0] sm:$0xf]  ;;  %v1394_v3 = vor.u32 %v1862_v1, %v1393_v0  ;;  %v1878_v4 = vld [vmem:[#allocation6 + $0xf4] sm:$0xf0]  ;;  %v1385_v11 = vld [vmem:[#allocation6 + $0x60] sm:$0xf] }
  0x18   :  { %v1521_v5 = vld [vmem:[#allocation6 + $0x170] sm:$0xf]  ;;  %v1894_v6 = vld [vmem:[#allocation6 + $0x174] sm:$0xf0]  ;;  %v1458_v7 = vor.u32 %v1878_v4, %v1457_v2  ;;  %v1860_v13 = vld [vmem:[#allocation6 + $0x64] sm:$0xf0] }
  0x19   :  { %v1522_v8 = vor.u32 %v1894_v6, %v1521_v5  ;;  %v1585_v9 = vld [vmem:[#allocation6 + $0x1f0] sm:$0xf]  ;;  %v1910_v10 = vld [vmem:[#allocation6 + $0x1f4] sm:$0xf0]  ;;  %501 = vmatpush.bf16.msra.mxu0 %v1394_v3  ;;  %v1449_v14 = vld [vmem:[#allocation6 + $0xe0] sm:$0xf]  ;;  %v1386_v16 = vor.u32 %v1860_v13, %v1385_v11 }
  0x1a   :  { %v1586_v12 = vor.u32 %v1910_v10, %v1585_v9  ;;  %v1876_v15 = vld [vmem:[#allocation6 + $0xe4] sm:$0xf0]  ;;  %514 = vmatpush.bf16.msra.mxu1 %v1458_v7  ;;  %v1513_v18 = vld [vmem:[#allocation6 + $0x160] sm:$0xf]  ;;  %v1377_v23 = vld [vmem:[#allocation6 + $0x50] sm:$0xf] }
  0x1b   :  { %527 = vmatpush.bf16.msra.mxu2 %v1522_v8  ;;  %v1450_v17 = vor.u32 %v1876_v15, %v1449_v14  ;;  %v1892_v19 = vld [vmem:[#allocation6 + $0x164] sm:$0xf0]  ;;  %v1577_v20 = vld [vmem:[#allocation6 + $0x1e0] sm:$0xf]  ;;  %v1858_v24 = vld [vmem:[#allocation6 + $0x54] sm:$0xf0] }
  0x1c   :  { %540 = vmatpush.bf16.msra.mxu3 %v1586_v12  ;;  %v1514_v21 = vor.u32 %v1892_v19, %v1513_v18  ;;  %v1908_v22 = vld [vmem:[#allocation6 + $0x1e4] sm:$0xf0]  ;;  %v1441_v26 = vld [vmem:[#allocation6 + $0xd0] sm:$0xf]  ;;  %v1874_v27 = vld [vmem:[#allocation6 + $0xd4] sm:$0xf0]  ;;  %v1378_v29 = vor.u32 %v1858_v24, %v1377_v23 }
  0x1d   :  { %v1578_v25 = vor.u32 %v1908_v22, %v1577_v20  ;;  %v1505_v28 = vld [vmem:[#allocation6 + $0x150] sm:$0xf]  ;;  %502 = vmatpush.bf16.msra.mxu0 %v1386_v16  ;;  %v1890_v30 = vld [vmem:[#allocation6 + $0x154] sm:$0xf0]  ;;  %v1442_v33 = vor.u32 %v1874_v27, %v1441_v26  ;;  %v1369_v35 = vld [vmem:[#allocation6 + $0x40] sm:$0xf] }
  0x1e   :  { %v1569_v31 = vld [vmem:[#allocation6 + $0x1d0] sm:$0xf]  ;;  %v1906_v32 = vld [vmem:[#allocation6 + $0x1d4] sm:$0xf0]  ;;  %515 = vmatpush.bf16.msra.mxu1 %v1450_v17  ;;  %v1506_v34 = vor.u32 %v1890_v30, %v1505_v28  ;;  %v1856_v36 = vld [vmem:[#allocation6 + $0x44] sm:$0xf0] }
  0x1f   :  { %528 = vmatpush.bf16.msra.mxu2 %v1514_v21  ;;  %v1433_v37 = vld [vmem:[#allocation6 + $0xc0] sm:$0xf]  ;;  %v1570_v38 = vor.u32 %v1906_v32, %v1569_v31  ;;  %v1872_v39 = vld [vmem:[#allocation6 + $0xc4] sm:$0xf0]  ;;  %v1370_v44 = vor.u32 %v1856_v36, %v1369_v35  ;;  %v1361_v47 = vld [vmem:[#allocation6 + $0x30] sm:$0xf] }
  0x20   :  { %541 = vmatpush.bf16.msra.mxu3 %v1578_v25  ;;  %v1497_v40 = vld [vmem:[#allocation6 + $0x140] sm:$0xf]  ;;  %v1888_v41 = vld [vmem:[#allocation6 + $0x144] sm:$0xf0]  ;;  %v1434_v45 = vor.u32 %v1872_v39, %v1433_v37  ;;  %v1854_v48 = vld [vmem:[#allocation6 + $0x34] sm:$0xf0] }
  0x21   :  { %v1561_v42 = vld [vmem:[#allocation6 + $0x1c0] sm:$0xf]  ;;  %v1904_v43 = vld [vmem:[#allocation6 + $0x1c4] sm:$0xf0]  ;;  %503 = vmatpush.bf16.msra.mxu0 %v1378_v29  ;;  %v1498_v46 = vor.u32 %v1888_v41, %v1497_v40  ;;  %v1425_v49 = vld [vmem:[#allocation6 + $0xb0] sm:$0xf]  ;;  %v1362_v56 = vor.u32 %v1854_v48, %v1361_v47 }
  0x22   :  { %516 = vmatpush.bf16.msra.mxu1 %v1442_v33  ;;  %v1562_v50 = vor.u32 %v1904_v43, %v1561_v42  ;;  %v1870_v51 = vld [vmem:[#allocation6 + $0xb4] sm:$0xf0]  ;;  %v1489_v52 = vld [vmem:[#allocation6 + $0x130] sm:$0xf]  ;;  %v1353_v59 = vld [vmem:[#allocation6 + $0x20] sm:$0xf] }
  0x23   :  { %529 = vmatpush.bf16.msra.mxu2 %v1506_v34  ;;  %v1886_v53 = vld [vmem:[#allocation6 + $0x134] sm:$0xf0]  ;;  %v1553_v54 = vld [vmem:[#allocation6 + $0x1b0] sm:$0xf]  ;;  %v1426_v57 = vor.u32 %v1870_v51, %v1425_v49  ;;  %v1852_v60 = vld [vmem:[#allocation6 + $0x24] sm:$0xf0] }
  0x24   :  { %542 = vmatpush.bf16.msra.mxu3 %v1570_v38  ;;  %v1902_v55 = vld [vmem:[#allocation6 + $0x1b4] sm:$0xf0]  ;;  %v1490_v58 = vor.u32 %v1886_v53, %v1489_v52  ;;  %v1417_v61 = vld [vmem:[#allocation6 + $0xa0] sm:$0xf]  ;;  %v1868_v63 = vld [vmem:[#allocation6 + $0xa4] sm:$0xf0]  ;;  %v1354_v4 = vor.u32 %v1852_v60, %v1353_v59 }
  0x25   :  { %504 = vmatpush.bf16.msra.mxu0 %v1370_v44  ;;  %v1554_v62 = vor.u32 %v1902_v55, %v1553_v54  ;;  %v1481_v0 = vld [vmem:[#allocation6 + $0x120] sm:$0xf]  ;;  %v1884_v1 = vld [vmem:[#allocation6 + $0x124] sm:$0xf0]  ;;  %v1418_v5 = vor.u32 %v1868_v63, %v1417_v61  ;;  %v1345_v7 = vld [vmem:[#allocation6 + $0x10] sm:$0xf] }
  0x26   :  { %517 = vmatpush.bf16.msra.mxu1 %v1434_v45  ;;  %v1545_v2 = vld [vmem:[#allocation6 + $0x1a0] sm:$0xf]  ;;  %v1900_v3 = vld [vmem:[#allocation6 + $0x1a4] sm:$0xf0]  ;;  %v1482_v6 = vor.u32 %v1884_v1, %v1481_v0  ;;  %v1850_v8 = vld [vmem:[#allocation6 + $0x14] sm:$0xf0] }
  0x27   :  { %530 = vmatpush.bf16.msra.mxu2 %v1498_v46  ;;  %v1409_v9 = vld [vmem:[#allocation6 + $0x90] sm:$0xf]  ;;  %v1546_v10 = vor.u32 %v1900_v3, %v1545_v2  ;;  %v1866_v11 = vld [vmem:[#allocation6 + $0x94] sm:$0xf0]  ;;  %v1337_v16 = vld [vmem:[#allocation6] sm:$0xf]  ;;  %v1346_v17 = vor.u32 %v1850_v8, %v1345_v7 }
  0x28   :  { %543 = vmatpush.bf16.msra.mxu3 %v1562_v50  ;;  %v1473_v12 = vld [vmem:[#allocation6 + $0x110] sm:$0xf]  ;;  %v1882_v13 = vld [vmem:[#allocation6 + $0x114] sm:$0xf0]  ;;  %v1848_v18 = vld [vmem:[#allocation6 + $0x4] sm:$0xf0]  ;;  %v1410_v21 = vor.u32 %v1866_v11, %v1409_v9 }
  0x29   :  { %505 = vmatpush.bf16.msra.mxu0 %v1362_v56  ;;  %v1537_v14 = vld [vmem:[#allocation6 + $0x190] sm:$0xf]  ;;  %v1898_v15 = vld [vmem:[#allocation6 + $0x194] sm:$0xf0]  ;;  %v1401_v19 = vld [vmem:[#allocation6 + $0x80] sm:$0xf]  ;;  %v1474_v22 = vor.u32 %v1882_v13, %v1473_v12  ;;  %v1338_v32 = vor.u32 %v1848_v18, %v1337_v16 }
  0x2a   :  { %518 = vmatpush.bf16.msra.mxu1 %v1426_v57  ;;  %v1864_v20 = vld [vmem:[#allocation6 + $0x84] sm:$0xf0]  ;;  %v1465_v23 = vld [vmem:[#allocation6 + $0x100] sm:$0xf]  ;;  %v102_v25 = vld [vmem:[#allocation3] sm:$0xff]  ;;  %v1538_v26 = vor.u32 %v1898_v15, %v1537_v14  ;;  %vm605_vm0 = vcmask 1041408  }
  0x2b   :  { %531 = vmatpush.bf16.msra.mxu2 %v1490_v58  ;;  %v1880_v24 = vld [vmem:[#allocation6 + $0x104] sm:$0xf0]  ;;  %v1529_v27 = vld [vmem:[#allocation6 + $0x180] sm:$0xf]  ;;  %104 = vst [vmem:[#allocation1] ss:$4 sm:$0xff] %v102_v25  ;;  %v1402_v36 = vor.u32 %v1864_v20, %v1401_v19 }
  0x2c   :  { %544 = vmatpush.bf16.msra.mxu3 %v1554_v62  ;;  %v1896_v28 = vld [vmem:[#allocation6 + $0x184] sm:$0xf0]  ;;  %v1861_v29 = vld [vmem:[#allocation6 + $0x74] sm:$0xf]  ;;  %v1395_v30 = vld [vmem:[#allocation6 + $0x78] sm:$0xf0]  ;;  %v1466_v37 = vor.u32 %v1880_v24, %v1465_v23 }
  0x2d   :  { %506 = vmatpush.bf16.msra.mxu0 %v1354_v4  ;;  %v1877_v31 = vld [vmem:[#allocation6 + $0xf4] sm:$0xf]  ;;  %v1459_v33 = vld [vmem:[#allocation6 + $0xf8] sm:$0xf0]  ;;  %v1530_v40 = vor.u32 %v1896_v28, %v1529_v27  ;;  %v1398_v41 = vor.u32 %v1861_v29, %v1395_v30  ;;  %v1859_v42 = vld [vmem:[#allocation6 + $0x64] sm:$0xf] }
  0x2e   :  { %519 = vmatpush.bf16.msra.mxu1 %v1418_v5  ;;  %v1893_v34 = vld [vmem:[#allocation6 + $0x174] sm:$0xf]  ;;  %v1523_v35 = vld [vmem:[#allocation6 + $0x178] sm:$0xf0]  ;;  %v1387_v43 = vld [vmem:[#allocation6 + $0x68] sm:$0xf0]  ;;  %v1462_v44 = vor.u32 %v1877_v31, %v1459_v33 }
  0x2f   :  { %532 = vmatpush.bf16.msra.mxu2 %v1482_v6  ;;  %v1909_v38 = vld [vmem:[#allocation6 + $0x1f4] sm:$0xf]  ;;  %v1587_v39 = vld [vmem:[#allocation6 + $0x1f8] sm:$0xf0]  ;;  %v1526_v45 = vor.u32 %v1893_v34, %v1523_v35  ;;  %v1875_v46 = vld [vmem:[#allocation6 + $0xe4] sm:$0xf]  ;;  %v1390_v55 = vor.u32 %v1859_v42, %v1387_v43 }
  0x30   :  { %545 = vmatpush.bf16.msra.mxu3 %v1546_v10  ;;  %v1451_v47 = vld [vmem:[#allocation6 + $0xe8] sm:$0xf0]  ;;  %v1891_v48 = vld [vmem:[#allocation6 + $0x164] sm:$0xf]  ;;  %v1590_v49 = vor.u32 %v1909_v38, %v1587_v39  ;;  %v1857_v0 = vld [vmem:[#allocation6 + $0x54] sm:$0xf] }
  0x31   :  { %507 = vmatpush.bf16.msra.mxu0 %v1346_v17  ;;  %v1515_v50 = vld [vmem:[#allocation6 + $0x168] sm:$0xf0]  ;;  %v1907_v51 = vld [vmem:[#allocation6 + $0x1e4] sm:$0xf]  ;;  %v1454_v58 = vor.u32 %v1875_v46, %v1451_v47  ;;  %v1379_v1 = vld [vmem:[#allocation6 + $0x58] sm:$0xf0] }
  0x32   :  { %520 = vmatpush.bf16.msra.mxu1 %v1410_v21  ;;  %v1579_v52 = vld [vmem:[#allocation6 + $0x1e8] sm:$0xf0]  ;;  %v107_v53 = vld.sshfl [vmem:[#allocation1 + $0x10] sm:$0xff pattern:$0x73625140]  ;;  %v1518_v61 = vor.u32 %v1891_v48, %v1515_v50  ;;  %v1382_v9 = vor.u32 %v1857_v0, %v1379_v1  ;;  %vm672_vm6 = vcmask 1040384  }
  0x33   :  { %533 = vmatpush.bf16.msra.mxu2 %v1474_v22  ;;  %v108_v54 = vld.sshfl [vmem:[#allocation1 + $0x18] sm:$0xff pattern:$0x73625140]  ;;  %v2201_v56 = vpack.c.bf16 %v107_v53, %v107_v53  ;;  %v105_v59 = vld.sshfl [vmem:[#allocation1] sm:$0xff pattern:$0x73625140]  ;;  %v1582_v3 = vor.u32 %v1907_v51, %v1579_v52 }
  0x34   :  { %546 = vmatpush.bf16.msra.mxu3 %v1538_v26  ;;  %v2203_v57 = vpack.c.bf16 %v108_v54, %v108_v54  ;;  %v106_v60 = vld.sshfl [vmem:[#allocation1 + $0x8] sm:$0xff pattern:$0x73625140]  ;;  %v2205_v62 = vpack.c.bf16 %v105_v59, %v105_v59  ;;  %v1855_v12 = vld [vmem:[#allocation6 + $0x44] sm:$0xf]  ;;  %s2150_s21 = smov [#allocation12]  }
  0x35   :  { %508 = vmatpush.bf16.msra.mxu0 %v1338_v32  ;;  %v2207_v63 = vpack.c.bf16 %v106_v60, %v106_v60  ;;  %v1873_v2 = vld [vmem:[#allocation6 + $0xd4] sm:$0xf]  ;;  %v1443_v4 = vld [vmem:[#allocation6 + $0xd8] sm:$0xf0]  ;;  %v1371_v13 = vld [vmem:[#allocation6 + $0x48] sm:$0xf0] }
  0x36   :  { %521 = vmatpush.bf16.msra.mxu1 %v1402_v36  ;;  %v1889_v5 = vld [vmem:[#allocation6 + $0x154] sm:$0xf]  ;;  %v1507_v6 = vld [vmem:[#allocation6 + $0x158] sm:$0xf0]  ;;  %v1446_v10 = vor.u32 %v1873_v2, %v1443_v4  ;;  %v1871_v14 = vld [vmem:[#allocation6 + $0xc4] sm:$0xf]  ;;  %v1374_v21 = vor.u32 %v1855_v12, %v1371_v13 }
  0x37   :  { %534 = vmatpush.bf16.msra.mxu2 %v1466_v37  ;;  %v1905_v7 = vld [vmem:[#allocation6 + $0x1d4] sm:$0xf]  ;;  %v1571_v8 = vld [vmem:[#allocation6 + $0x1d8] sm:$0xf0]  ;;  %v1510_v11 = vor.u32 %v1889_v5, %v1507_v6  ;;  %v1435_v16 = vld [vmem:[#allocation6 + $0xc8] sm:$0xf0] }
  0x38   :  { %547 = vmatpush.bf16.msra.mxu3 %v1530_v40  ;;  %509 = vmatmul.bf16.vlgmr.msra.gmra.mxu0 %v2205_v62  ;;  %v1574_v15 = vor.u32 %v1905_v7, %v1571_v8  ;;  %v1887_v17 = vld [vmem:[#allocation6 + $0x144] sm:$0xf]  ;;  %v1499_v18 = vld [vmem:[#allocation6 + $0x148] sm:$0xf0]  ;;  %v1438_v22 = vor.u32 %v1871_v14, %v1435_v16  ;;  %v1853_v24 = vld [vmem:[#allocation6 + $0x34] sm:$0xf] }
  0x39   :  { %553 = vmatpush.bf16.msrb.mxu0 %v1398_v41  ;;  %522 = vmatmul.bf16.vlgmr.msra.gmra.mxu1 %v2207_v63  ;;  %v1903_v19 = vld [vmem:[#allocation6 + $0x1c4] sm:$0xf]  ;;  %v1563_v20 = vld [vmem:[#allocation6 + $0x1c8] sm:$0xf0]  ;;  %v1502_v23 = vor.u32 %v1887_v17, %v1499_v18  ;;  %v1363_v25 = vld [vmem:[#allocation6 + $0x38] sm:$0xf0] }
  0x3a   :  { %566 = vmatpush.bf16.msrb.mxu1 %v1462_v44  ;;  %535 = vmatmul.bf16.vlgmr.msra.gmra.mxu2 %v2201_v56  ;;  %v1869_v26 = vld [vmem:[#allocation6 + $0xb4] sm:$0xf]  ;;  %v1566_v27 = vor.u32 %v1903_v19, %v1563_v20  ;;  %v1427_v28 = vld [vmem:[#allocation6 + $0xb8] sm:$0xf0]  ;;  %v1366_v33 = vor.u32 %v1853_v24, %v1363_v25  ;;  %v1851_v36 = vld [vmem:[#allocation6 + $0x24] sm:$0xf] }
  0x3b   :  { %579 = vmatpush.bf16.msrb.mxu2 %v1526_v45  ;;  %548 = vmatmul.bf16.vlgmr.msra.gmra.mxu3 %v2203_v57  ;;  %v1885_v29 = vld [vmem:[#allocation6 + $0x134] sm:$0xf]  ;;  %v1491_v30 = vld [vmem:[#allocation6 + $0x138] sm:$0xf0]  ;;  %v1430_v34 = vor.u32 %v1869_v26, %v1427_v28  ;;  %v1355_v37 = vld [vmem:[#allocation6 + $0x28] sm:$0xf0] }
  0x3c   :  { %592 = vmatpush.bf16.msrb.mxu3 %v1590_v49  ;;  %v1901_v31 = vld [vmem:[#allocation6 + $0x1b4] sm:$0xf]  ;;  %v1555_v32 = vld [vmem:[#allocation6 + $0x1b8] sm:$0xf0]  ;;  %v1494_v35 = vor.u32 %v1885_v29, %v1491_v30  ;;  %v1867_v38 = vld [vmem:[#allocation6 + $0xa4] sm:$0xf]  ;;  %v1358_v45 = vor.u32 %v1851_v36, %v1355_v37 }
  0x3d   :  { %554 = vmatpush.bf16.msrb.mxu0 %v1390_v55  ;;  %v1558_v39 = vor.u32 %v1901_v31, %v1555_v32  ;;  %v1419_v40 = vld [vmem:[#allocation6 + $0xa8] sm:$0xf0]  ;;  %v1883_v41 = vld [vmem:[#allocation6 + $0x124] sm:$0xf]  ;;  %v1849_v48 = vld [vmem:[#allocation6 + $0x14] sm:$0xf] }
  0x3e   :  { %567 = vmatpush.bf16.msrb.mxu1 %v1454_v58  ;;  %v1483_v42 = vld [vmem:[#allocation6 + $0x128] sm:$0xf0]  ;;  %v1899_v43 = vld [vmem:[#allocation6 + $0x1a4] sm:$0xf]  ;;  %v1422_v46 = vor.u32 %v1867_v38, %v1419_v40  ;;  %v1347_v49 = vld [vmem:[#allocation6 + $0x18] sm:$0xf0] }
  0x3f   :  { %580 = vmatpush.bf16.msrb.mxu2 %v1518_v61  ;;  %v1547_v44 = vld [vmem:[#allocation6 + $0x1a8] sm:$0xf0]  ;;  %v1486_v47 = vor.u32 %v1883_v41, %v1483_v42  ;;  %v1865_v50 = vld [vmem:[#allocation6 + $0x94] sm:$0xf]  ;;  %v1411_v52 = vld [vmem:[#allocation6 + $0x98] sm:$0xf0]  ;;  %v1350_v59 = vor.u32 %v1849_v48, %v1347_v49 }
  0x40   :  { %593 = vmatpush.bf16.msrb.mxu3 %v1582_v3  ;;  %v1550_v51 = vor.u32 %v1899_v43, %v1547_v44  ;;  %v1881_v53 = vld [vmem:[#allocation6 + $0x114] sm:$0xf]  ;;  %v1475_v54 = vld [vmem:[#allocation6 + $0x118] sm:$0xf0]  ;;  %v1414_v60 = vor.u32 %v1865_v50, %v1411_v52  ;;  %v1847_v0 = vld [vmem:[#allocation6 + $0x4] sm:$0xf] }
  0x41   :  { %555 = vmatpush.bf16.msrb.mxu0 %v1382_v9  ;;  %v1897_v55 = vld [vmem:[#allocation6 + $0x194] sm:$0xf]  ;;  %v1539_v58 = vld [vmem:[#allocation6 + $0x198] sm:$0xf0]  ;;  %v1478_v61 = vor.u32 %v1881_v53, %v1475_v54  ;;  %v1339_v1 = vld [vmem:[#allocation6 + $0x8] sm:$0xf0] }
  0x42   :  { %568 = vmatpush.bf16.msrb.mxu1 %v1446_v10  ;;  %v1863_v2 = vld [vmem:[#allocation6 + $0x84] sm:$0xf]  ;;  %v1542_v3 = vor.u32 %v1897_v55, %v1539_v58  ;;  %v1403_v4 = vld [vmem:[#allocation6 + $0x88] sm:$0xf0]  ;;  %v1342_v9 = vor.u32 %v1847_v0, %v1339_v1  ;;  %v1926_v48 = vld [vmem:[#allocation8 + $0x74] sm:$0xf0] }
  0x43   :  { %581 = vmatpush.bf16.msrb.mxu2 %v1510_v11  ;;  %v1879_v5 = vld [vmem:[#allocation6 + $0x104] sm:$0xf]  ;;  %v1467_v6 = vld [vmem:[#allocation6 + $0x108] sm:$0xf0]  ;;  %v1406_v10 = vor.u32 %v1863_v2, %v1403_v4  ;;  %v1713_v49 = vld [vmem:[#allocation8 + $0xf0] sm:$0xf] }
  0x44   :  { %594 = vmatpush.bf16.msrb.mxu3 %v1574_v15  ;;  %v1895_v7 = vld [vmem:[#allocation6 + $0x184] sm:$0xf]  ;;  %v1531_v8 = vld [vmem:[#allocation6 + $0x188] sm:$0xf0]  ;;  %v1470_v11 = vor.u32 %v1879_v5, %v1467_v6  ;;  %v1925_v52 = vld [vmem:[#allocation8 + $0x74] sm:$0xf] }
  0x45   :  { %556 = vmatpush.bf16.msrb.mxu0 %v1374_v21  ;;  %v1534_v12 = vor.u32 %v1895_v7, %v1531_v8  ;;  %v1651_v53 = vld [vmem:[#allocation8 + $0x78] sm:$0xf0]  ;;  %v1641_v4 = vld [vmem:[#allocation8 + $0x60] sm:$0xf]  ;;  %v1924_v5 = vld [vmem:[#allocation8 + $0x64] sm:$0xf0] }
  0x46   :  { %569 = vmatpush.bf16.msrb.mxu1 %v1438_v22  ;;  %v1654_v1 = vor.u32 %v1925_v52, %v1651_v53  ;;  %v1935_v52 = vld [vmem:[#allocation8 + $0xc4] sm:$0xf]  ;;  %v1691_v53 = vld [vmem:[#allocation8 + $0xc8] sm:$0xf0]  ;;  %s1321_s22 = sshll.u32 %s2150_s21, 4  ;;  %s1323_s25 = sshll.u32 %s2327_s6, 4  ;;  %s1322_s22 = int_to_ptr.vmem [resolvable:$true] %s1321_s22  ;;  %s1324_s25 = int_to_ptr.hbm [resolvable:$true] %s1323_s25 }
  0x47   :  { %582 = vmatpush.bf16.msrb.mxu2 %v1502_v23 }
  0x48   :  { %595 = vmatpush.bf16.msrb.mxu3 %v1566_v27 }
  0x49   :  { %557 = vmatpush.bf16.msrb.mxu0 %v1366_v33 }
  0x4a   :  { %570 = vmatpush.bf16.msrb.mxu1 %v1430_v34 }
  0x4b   :  { %583 = vmatpush.bf16.msrb.mxu2 %v1494_v35 }
  0x4c   :  { %596 = vmatpush.bf16.msrb.mxu3 %v1558_v39 }
  0x4d   :  { %558 = vmatpush.bf16.msrb.mxu0 %v1358_v45 }
  0x4e   :  { %571 = vmatpush.bf16.msrb.mxu1 %v1422_v46 }
  0x4f   :  { %584 = vmatpush.bf16.msrb.mxu2 %v1486_v47  ;;  %v1649_v47 = vld [vmem:[#allocation8 + $0x70] sm:$0xf] }
  0x50   :  { %597 = vmatpush.bf16.msrb.mxu3 %v1550_v51  ;;  %v1650_v50 = vor.u32 %v1926_v48, %v1649_v47  ;;  %v1942_v51 = vld [vmem:[#allocation8 + $0xf4] sm:$0xf0]  ;;  %v1627_v48 = vld [vmem:[#allocation8 + $0x48] sm:$0xf0] }
  0x51   :  { %559 = vmatpush.bf16.msrb.mxu0 %v1350_v59  ;;  %v1941_v59 = vld [vmem:[#allocation8 + $0xf4] sm:$0xf]  ;;  %v1714_v0 = vor.u32 %v1942_v51, %v1713_v49 }
  0x52   :  { %572 = vmatpush.bf16.msrb.mxu1 %v1414_v60  ;;  %v1715_v60 = vld [vmem:[#allocation8 + $0xf8] sm:$0xf0] }
  0x53   :  { %585 = vmatpush.bf16.msrb.mxu2 %v1478_v61  ;;  %v1718_v2 = vor.u32 %v1941_v59, %v1715_v60  ;;  %v1681_v59 = vld [vmem:[#allocation8 + $0xb0] sm:$0xf] }
  0x54   :  { %598 = vmatpush.bf16.msrb.mxu3 %v1542_v3 }
  0x55   :  { %560 = vmatpush.bf16.msrb.mxu0 %v1342_v9  ;;  %v1642_v9 = vor.u32 %v1924_v5, %v1641_v4  ;;  %v1619_v4 = vld [vmem:[#allocation8 + $0x38] sm:$0xf0]  ;;  %v1933_v5 = vld [vmem:[#allocation8 + $0xb4] sm:$0xf] }
  0x56   :  { %573 = vmatpush.bf16.msrb.mxu1 %v1406_v10  ;;  %v1705_v10 = vld [vmem:[#allocation8 + $0xe0] sm:$0xf] }
  0x57   :  { %586 = vmatpush.bf16.msrb.mxu2 %v1470_v11  ;;  %v1940_v11 = vld [vmem:[#allocation8 + $0xe4] sm:$0xf0] }
  0x58   :  { %599 = vmatpush.bf16.msrb.mxu3 %v1534_v12  ;;  %561 = vmatmul.bf16.vlgmr.msrb.gmra.mxu0 %v2205_v62 }
  0x59   :  { %574 = vmatmul.bf16.vlgmr.msrb.gmra.mxu1 %v2207_v63  ;;  %896 = vmatpush.bf16.msra.mxu0 %v1650_v50 }
  0x5a   :  { %587 = vmatmul.bf16.vlgmr.msrb.gmra.mxu2 %v2201_v56  ;;  %909 = vmatpush.bf16.msra.mxu1 %v1714_v0 }
  0x5b   :  { %600 = vmatmul.bf16.vlgmr.msrb.gmra.mxu3 %v2203_v57  ;;  %922 = vmatpush.bf16.msra.mxu2 %v1654_v1  ;;  %v1934_v1 = vld [vmem:[#allocation8 + $0xb4] sm:$0xf0] }
  0x5c   :  { %935 = vmatpush.bf16.msra.mxu3 %v1718_v2  ;;  %v1917_v2 = vld [vmem:[#allocation8 + $0x34] sm:$0xf] }
  0x5d   :  { %897 = vmatpush.bf16.msra.mxu0 %v1642_v9 }
  0xb5   :  { %v510_v13 = vpop.f32.mrf.mxu0 }
  0xb6   :  { %v523_v14 = vpop.f32.mrf.mxu1 }
  0xb7   :  { %v524_v15 = vadd.f32 %v523_v14, %v510_v13  ;;  %v1706_v13 = vor.u32 %v1940_v11, %v1705_v10  ;;  %v1923_v14 = vld [vmem:[#allocation8 + $0x64] sm:$0xf]  ;;  %v1609_v10 = vld [vmem:[#allocation8 + $0x20] sm:$0xf]  ;;  %v1916_v11 = vld [vmem:[#allocation8 + $0x24] sm:$0xf0] }
  0xb9   :  { %910 = vmatpush.bf16.msra.mxu1 %v1706_v13 }
  0xbd   :  { %v536_v16 = vpop.f32.mrf.mxu2  ;;  %v512_v20 = vpop.f32.mrf.mxu0 }
  0xbe   :  { %v537_v17 = vadd.f32 %v536_v16, %v524_v15  ;;  %v549_v18 = vpop.f32.mrf.mxu3  ;;  %v525_v21 = vpop.f32.mrf.mxu1  ;;  %v1643_v15 = vld [vmem:[#allocation8 + $0x68] sm:$0xf0] }
  0xbf   :  { %v1646_v20 = vor.u32 %v1923_v14, %v1643_v15  ;;  %v1939_v21 = vld [vmem:[#allocation8 + $0xe4] sm:$0xf]  ;;  %v1610_v15 = vor.u32 %v1916_v11, %v1609_v10 }
  0xc0   :  { %v2217_v19 = vadd.f32 %v549_v18, %v537_v17 }
  0xc1   :  { %923 = vmatpush.bf16.msra.mxu2 %v1646_v20  ;;  %v1611_v20 = vld [vmem:[#allocation8 + $0x28] sm:$0xf0] }
  0xc2   :  { %v606_v62 = vsel %vm605_vm0, %v2217_v19, 0.0  ;;  %v622_v63 = vmul.f32 %v2217_v19, %v2217_v19 }
  0xc3   :  { %v607_v56 = vrot.slane %v606_v62, 4 }
  0xc4   :  { %v624_v57 = vsel %vm605_vm0, %v622_v63, 0.0 }
  0xc5   :  { %v608_v22 = vadd.f32 %v607_v56, %v606_v62  ;;  %v625_v23 = vrot.slane %v624_v57, 4  ;;  %v538_v24 = vpop.f32.mrf.mxu2  ;;  %v1707_v62 = vld [vmem:[#allocation8 + $0xe8] sm:$0xf0]  ;;  %v1633_v56 = vld [vmem:[#allocation8 + $0x50] sm:$0xf] }
  0xc6   :  { %v551_v25 = vpop.f32.mrf.mxu3  ;;  %v1710_v63 = vor.u32 %v1939_v21, %v1707_v62  ;;  %v1931_v21 = vld [vmem:[#allocation8 + $0xa4] sm:$0xf]  ;;  %v1675_v62 = vld [vmem:[#allocation8 + $0xa8] sm:$0xf0] }
  0xc7   :  { %v609_v26 = vrot.slane %v608_v22, 2  ;;  %v626_v27 = vadd.f32 %v625_v23, %v624_v57  ;;  %v1922_v57 = vld [vmem:[#allocation8 + $0x54] sm:$0xf0]  ;;  %v1697_v25 = vld [vmem:[#allocation8 + $0xd0] sm:$0xf] }
  0xc8   :  { %v1634_v24 = vor.u32 %v1922_v57, %v1633_v56  ;;  %936 = vmatpush.bf16.msra.mxu3 %v1710_v63  ;;  %v1678_v57 = vor.u32 %v1931_v21, %v1675_v62 }
  0xc9   :  { %v610_v28 = vadd.f32 %v609_v26, %v608_v22  ;;  %v627_v29 = vrot.slane %v626_v27, 2  ;;  %v1938_v26 = vld [vmem:[#allocation8 + $0xd4] sm:$0xf0] }
  0xca   :  { %898 = vmatpush.bf16.msra.mxu0 %v1634_v24  ;;  %v1914_v24 = vld [vmem:[#allocation8 + $0x14] sm:$0xf0] }
  0xcb   :  { %v611_v30 = vrot.slane %v610_v28, 1  ;;  %v628_v31 = vadd.f32 %v627_v29, %v626_v27  ;;  %v1698_v27 = vor.u32 %v1938_v26, %v1697_v25  ;;  %v1635_v29 = vld [vmem:[#allocation8 + $0x58] sm:$0xf0]  ;;  %v1665_v25 = vld [vmem:[#allocation8 + $0x90] sm:$0xf] }
  0xcd   :  { %v612_v32 = vadd.f32 %v611_v30, %v610_v28  ;;  %v629_v33 = vrot.slane %v628_v31, 1  ;;  %v1921_v28 = vld [vmem:[#allocation8 + $0x54] sm:$0xf]  ;;  %911 = vmatpush.bf16.msra.mxu1 %v1698_v27  ;;  %v1930_v27 = vld [vmem:[#allocation8 + $0x94] sm:$0xf0] }
  0xce   :  { %v1937_v30 = vld [vmem:[#allocation8 + $0xd4] sm:$0xf] }
  0xcf   :  { %v2224_v36 = vmul.f32 0.5, %v612_v32  ;;  %v630_v37 = vadd.f32 %v629_v33, %v628_v31 }
  0xd1   :  { %v638_v40 = vmul.f32 0.5, %v630_v37  ;;  %v640_v41 = vmul.f32 %v2224_v36, %v2224_v36 }
  0xd3   :  { %v642_v54 = vsub.f32 %v638_v40, %v640_v41  ;;  %v1689_v40 = vld [vmem:[#allocation8 + $0xc0] sm:$0xf] }
  0xd5   :  { %v562_v34 = vpop.f32.mrf.mxu0  ;;  %v644_v16 = vmax.f32 %v642_v54, 0.0  ;;  %v1694_v54 = vor.u32 %v1935_v52, %v1691_v53 }
  0xd6   :  { %v575_v35 = vpop.f32.mrf.mxu1 }
  0xd7   :  { %v576_v38 = vadd.f32 %v575_v35, %v562_v34  ;;  %v2235_v31 = vadd.f32 1e-05, %v644_v16  ;;  %v1638_v34 = vor.u32 %v1921_v28, %v1635_v29  ;;  %v1699_v35 = vld [vmem:[#allocation8 + $0xd8] sm:$0xf0]  ;;  %v1932_v16 = vld [vmem:[#allocation8 + $0xa4] sm:$0xf0] }
  0xd8   :  { %v1702_v37 = vor.u32 %v1937_v30, %v1699_v35  ;;  %v1913_v28 = vld [vmem:[#allocation8 + $0x14] sm:$0xf]  ;;  %v1603_v29 = vld [vmem:[#allocation8 + $0x18] sm:$0xf0]  ;;  %v1666_v30 = vor.u32 %v1930_v27, %v1665_v25 }
  0xd9   :  { %924 = vmatpush.bf16.msra.mxu2 %v1638_v34  ;;  %1983 = vrsqrt.f32 %v2235_v31  ;;  %v1667_v34 = vld [vmem:[#allocation8 + $0x98] sm:$0xf0]  ;;  %vm655_vm2 = vweird.f32 %v2235_v31 }
  0xda   :  { %937 = vmatpush.bf16.msra.mxu3 %v1702_v37 }
  0xdd   :  { %v588_v39 = vpop.f32.mrf.mxu2  ;;  %v564_v44 = vpop.f32.mrf.mxu0 }
  0xde   :  { %v589_v42 = vadd.f32 %v588_v39, %v576_v38  ;;  %v601_v43 = vpop.f32.mrf.mxu3  ;;  %v577_v45 = vpop.f32.mrf.mxu1  ;;  %v1625_v38 = vld [vmem:[#allocation8 + $0x40] sm:$0xf]  ;;  %v1920_v39 = vld [vmem:[#allocation8 + $0x44] sm:$0xf0]  ;;  %938 = vmatpush.bf16.msra.mxu3 %v1694_v54 }
  0xdf   :  { %v1936_v44 = vld [vmem:[#allocation8 + $0xc4] sm:$0xf0]  ;;  %v1919_v45 = vld [vmem:[#allocation8 + $0x44] sm:$0xf]  ;;  %v2242_v13 = vpop.eup %1983 }
  0xe0   :  { %v2228_v46 = vadd.f32 %v601_v43, %v589_v42  ;;  %v1626_v43 = vor.u32 %v1920_v39, %v1625_v38  ;;  %v1690_v47 = vor.u32 %v1936_v44, %v1689_v40  ;;  %v1630_v51 = vor.u32 %v1919_v45, %v1627_v48  ;;  %v1593_v38 = vld [vmem:[#allocation8] sm:$0xf]  ;;  %v1912_v39 = vld [vmem:[#allocation8 + $0x4] sm:$0xf0]  ;;  %v1595_v44 = vld [vmem:[#allocation8 + $0x8] sm:$0xf0] }
  0xe1   :  { %v1657_v40 = vld [vmem:[#allocation8 + $0x80] sm:$0xf]  ;;  %v1927_v48 = vld [vmem:[#allocation8 + $0x84] sm:$0xf]  ;;  %vm656_vm3 = vweird.f32 %v2242_v13 }
  0xe2   :  { %v613_v55 = vsel %vm605_vm0, %v2228_v46, 0.0  ;;  %v623_v58 = vmul.f32 %v2228_v46, %v2228_v46  ;;  %899 = vmatpush.bf16.msra.mxu0 %v1626_v43  ;;  %912 = vmatpush.bf16.msra.mxu1 %v1690_v47  ;;  %v1911_v43 = vld [vmem:[#allocation8 + $0x4] sm:$0xf]  ;;  %vm657_vm7 = vmor %vm655_vm2, %vm656_vm3 }
  0xe3   :  { %v614_v61 = vrot.slane %v613_v55, 4  ;;  %925 = vmatpush.bf16.msra.mxu2 %v1630_v51  ;;  %v1598_v47 = vor.u32 %v1911_v43, %v1595_v44 }
  0xe4   :  { %v631_v3 = vsel %vm605_vm0, %v623_v58, 0.0  ;;  %v1918_v58 = vld [vmem:[#allocation8 + $0x34] sm:$0xf0] }
  0xe5   :  { %v615_v6 = vadd.f32 %v614_v61, %v613_v55  ;;  %v632_v7 = vrot.slane %v631_v3, 4  ;;  %v590_v8 = vpop.f32.mrf.mxu2  ;;  %v1617_v55 = vld [vmem:[#allocation8 + $0x30] sm:$0xf] }
  0xe6   :  { %v603_v12 = vpop.f32.mrf.mxu3  ;;  %v1618_v0 = vor.u32 %v1918_v58, %v1617_v55  ;;  %v1622_v8 = vor.u32 %v1917_v2, %v1619_v4  ;;  %v646_v2 = vld [vmem:[#allocation9] ss:$4 sm:$0x3] }
  0xe7   :  { %v616_v17 = vrot.slane %v615_v6, 2  ;;  %v633_v18 = vadd.f32 %v632_v7, %v631_v3  ;;  %v1682_v3 = vor.u32 %v1934_v1, %v1681_v59  ;;  %v1673_v12 = vld [vmem:[#allocation8 + $0xa0] sm:$0xf] }
  0xe8   :  { %900 = vmatpush.bf16.msra.mxu0 %v1618_v0  ;;  %926 = vmatpush.bf16.msra.mxu2 %v1622_v8 }
  0xe9   :  { %v617_v22 = vadd.f32 %v616_v17, %v615_v6  ;;  %v634_v23 = vrot.slane %v633_v18, 2  ;;  %v1683_v6 = vld [vmem:[#allocation8 + $0xb8] sm:$0xf0]  ;;  %913 = vmatpush.bf16.msra.mxu1 %v1682_v3  ;;  %v1915_v17 = vld [vmem:[#allocation8 + $0x24] sm:$0xf] }
  0xea   :  { %v1686_v9 = vor.u32 %v1933_v5, %v1683_v6  ;;  %v1614_v56 = vor.u32 %v1915_v17, %v1611_v20 }
  0xeb   :  { %v618_v32 = vrot.slane %v617_v22, 1  ;;  %v635_v33 = vadd.f32 %v634_v23, %v633_v18  ;;  %v1674_v18 = vor.u32 %v1932_v16, %v1673_v12  ;;  %v1601_v23 = vld [vmem:[#allocation8 + $0x10] sm:$0xf] }
  0xec   :  { %939 = vmatpush.bf16.msra.mxu3 %v1686_v9  ;;  %901 = vmatpush.bf16.msra.mxu0 %v1610_v15  ;;  %v1602_v26 = vor.u32 %v1914_v24, %v1601_v23  ;;  %v677_v9 = vld [vmem:[#allocation9 + $0x1] ss:$4 sm:$0x3] }
  0xed   :  { %v619_v41 = vadd.f32 %v618_v32, %v617_v22  ;;  %v636_v42 = vrot.slane %v635_v33, 1  ;;  %v650_v22 = vmul.f32 %v2242_v13, %v2235_v31  ;;  %914 = vmatpush.bf16.msra.mxu1 %v1674_v18  ;;  %927 = vmatpush.bf16.msra.mxu2 %v1614_v56  ;;  %v1606_v32 = vor.u32 %v1913_v28, %v1603_v29 }
  0xef   :  { %v2238_v49 = vmul.f32 0.5, %v619_v41  ;;  %v637_v50 = vadd.f32 %v636_v42, %v635_v33  ;;  %v1929_v33 = vld [vmem:[#allocation8 + $0x94] sm:$0xf]  ;;  %v651_v37 = vmul.f32 %v2242_v13, %v650_v22  ;;  %v1594_v41 = vor.u32 %v1912_v39, %v1593_v38  ;;  %v1928_v42 = vld [vmem:[#allocation8 + $0x84] sm:$0xf0] }
  0xf0   :  { %940 = vmatpush.bf16.msra.mxu3 %v1678_v57  ;;  %902 = vmatpush.bf16.msra.mxu0 %v1602_v26  ;;  %v1670_v35 = vor.u32 %v1929_v33, %v1667_v34  ;;  %v1658_v45 = vor.u32 %v1928_v42, %v1657_v40 }
  0xf1   :  { %v639_v60 = vmul.f32 0.5, %v637_v50  ;;  %v641_v61 = vmul.f32 %v2238_v49, %v2238_v49  ;;  %915 = vmatpush.bf16.msra.mxu1 %v1666_v30  ;;  %928 = vmatpush.bf16.msra.mxu2 %v1606_v32  ;;  %v1659_v50 = vld [vmem:[#allocation8 + $0x88] sm:$0xf0]  ;;  %v652_v53 = vmul.f32 0.5, %v651_v37 }
  0xf2   :  { %v1662_v52 = vor.u32 %v1927_v48, %v1659_v50 }
  0xf3   :  { %v643_v7 = vsub.f32 %v639_v60, %v641_v61  ;;  %v653_v58 = vsub.f32 1.5, %v652_v53 }
  0xf4   :  { %941 = vmatpush.bf16.msra.mxu3 %v1670_v35  ;;  %903 = vmatpush.bf16.msra.mxu0 %v1594_v41 }
  0xf5   :  { %v645_v14 = vmax.f32 %v643_v7, 0.0  ;;  %916 = vmatpush.bf16.msra.mxu1 %v1658_v45  ;;  %929 = vmatpush.bf16.msra.mxu2 %v1598_v47  ;;  %v654_v61 = vmul.f32 %v2242_v13, %v653_v58 }
  0xf7   :  { %v648_v63 = vadd.f32 1e-05, %v645_v14  ;;  %v658_v4 = vsel %vm657_vm7, %v2242_v13, %v654_v61 }
  0xf8   :  { %942 = vmatpush.bf16.msra.mxu3 %v1662_v52 }
  0xf9   :  { %1985 = vrsqrt.f32 %v648_v63  ;;  %vm665_vm4 = vweird.f32 %v648_v63 }
  0xff   :  { %v1986_v51 = vpop.eup %1985 }
 0x100   :  { %v660_v54 = vmul.f32 %v1986_v51, %v648_v63  ;;  %vm666_vm1 = vweird.f32 %v1986_v51 }
 0x101   :  { %vm667_vm5 = vmor %vm665_vm4, %vm666_vm1 }
 0x102   :  { %v661_v55 = vmul.f32 %v1986_v51, %v660_v54 }
 0x104   :  { %v662_v59 = vmul.f32 0.5, %v661_v55 }
 0x106   :  { %v663_v60 = vsub.f32 1.5, %v662_v59 }
 0x108   :  { %v664_v0 = vmul.f32 %v1986_v51, %v663_v60 }
 0x10a   :  { %v668_v1 = vsel %vm667_vm5, %v1986_v51, %v664_v0 }
 0x10b   :  { %v671_v3 = vrot.slane %v668_v1, 7 }
 0x10d   :  { %v673_v5 = vsel %vm672_vm6, %v658_v4, %v671_v3 }
 0x10e   :  { %v675_v6 = vmul.f32 %v673_v5, %v646_v2 }
 0x110   :  { %v679_v7 = vperm.slane %v675_v6, 0  ;;  %v680_v8 = vperm.slane %v675_v6, 1 }
 0x112   :  { %v684_v31 = vmul.f32 %v680_v8, %v2238_v49  ;;  %v683_v10 = vmul.f32 %v679_v7, %v2224_v36  ;;  %v692_v15 = vmul.f32 %v680_v8, %v2228_v46  ;;  %v691_v17 = vmul.f32 %v679_v7, %v2217_v19 }
 0x114   :  { %v687_v11 = vrot.slane %v684_v31, 7 }
 0x116   :  { %v688_v12 = vsel %vm672_vm6, %v683_v10, %v687_v11  ;;  %v1958_v10 = vld [vmem:[#allocation11 + $0x74] sm:$0xf0]  ;;  %v1841_v11 = vld [vmem:[#allocation11 + $0xf0] sm:$0xf] }
 0x117   :  { %v690_v14 = vsub.f32 %v677_v9, %v688_v12  ;;  %v1777_v9 = vld [vmem:[#allocation11 + $0x70] sm:$0xf] }
 0x119   :  { %v695_v16 = vperm.slane %v690_v14, 1  ;;  %v694_v13 = vperm.slane %v690_v14, 0  ;;  %v1778_v14 = vor.u32 %v1958_v10, %v1777_v9  ;;  %v1950_v9 = vld [vmem:[#allocation11 + $0x34] sm:$0xf0]  ;;  %v1809_v10 = vld [vmem:[#allocation11 + $0xb0] sm:$0xf] }
 0x11b   :  { %v699_v18 = vadd.f32 %v695_v16, %v692_v15  ;;  %v698_v20 = vadd.f32 %v694_v13, %v691_v17  ;;  %v1974_v15 = vld [vmem:[#allocation11 + $0xf4] sm:$0xf0]  ;;  %v1957_v16 = vld [vmem:[#allocation11 + $0x74] sm:$0xf]  ;;  %v1779_v17 = vld [vmem:[#allocation11 + $0x78] sm:$0xf0]  ;;  %1257 = vmatpush.bf16.msrb.mxu0 %v1778_v14 }
 0x11c   :  { %v1842_v13 = vor.u32 %v1974_v15, %v1841_v11  ;;  %v1949_v14 = vld [vmem:[#allocation11 + $0x34] sm:$0xf]  ;;  %v1747_v15 = vld [vmem:[#allocation11 + $0x38] sm:$0xf0] }
 0x11d   :  { %v701_v21 = vmax.f32 %v699_v18, 0.0  ;;  %v700_v62 = vmax.f32 %v698_v20, 0.0  ;;  %v1782_v18 = vor.u32 %v1957_v16, %v1779_v17  ;;  %v1973_v20 = vld [vmem:[#allocation11 + $0xf4] sm:$0xf] }
 0x11e   :  { %1270 = vmatpush.bf16.msrb.mxu1 %v1842_v13 }
 0x11f   :  { %v702_v63 = vpack.c.bf16 %v700_v62, %v700_v62  ;;  %v703_v56 = vpack.c.bf16 %v701_v21, %v701_v21  ;;  %v1843_v21 = vld [vmem:[#allocation11 + $0xf8] sm:$0xf0]  ;;  %1283 = vmatpush.bf16.msrb.mxu2 %v1782_v18  ;;  %v1750_v18 = vor.u32 %v1949_v14, %v1747_v15 }
 0x121   :  { %904 = vmatmul.bf16.vlgmr.msra.gmra.mxu0 %v702_v63  ;;  %917 = vmatmul.bf16.vlgmr.msra.gmra.mxu1 %v703_v56 }
 0x122   :  { %930 = vmatmul.bf16.vlgmr.msra.gmra.mxu2 %v702_v63  ;;  %943 = vmatmul.bf16.vlgmr.msra.gmra.mxu3 %v703_v56  ;;  %v1846_v63 = vor.u32 %v1973_v20, %v1843_v21  ;;  %v1769_v56 = vld [vmem:[#allocation11 + $0x60] sm:$0xf]  ;;  %v1965_v20 = vld [vmem:[#allocation11 + $0xb4] sm:$0xf]  ;;  %v1811_v21 = vld [vmem:[#allocation11 + $0xb8] sm:$0xf0] }
 0x124   :  { %1296 = vmatpush.bf16.msrb.mxu3 %v1846_v63 }
 0x19e   :  { %v905_v36 = vpop.f32.mrf.mxu0  ;;  %v918_v49 = vpop.f32.mrf.mxu1 }
 0x19f   :  { %v2257_v57 = vadd.f32 %v918_v49, %v905_v36  ;;  %v1956_v36 = vld [vmem:[#allocation11 + $0x64] sm:$0xf0]  ;;  %v1833_v49 = vld [vmem:[#allocation11 + $0xe0] sm:$0xf] }
 0x1a1   :  { %v948_v46 = vsel %vm605_vm0, %v2257_v57, 0.0  ;;  %v964_v19 = vmul.f32 %v2257_v57, %v2257_v57 }
 0x1a2   :  { %v949_v22 = vrot.slane %v948_v46, 4 }
 0x1a3   :  { %v966_v23 = vsel %vm605_vm0, %v964_v19, 0.0  ;;  %v1770_v19 = vor.u32 %v1956_v36, %v1769_v56  ;;  %v1737_v56 = vld [vmem:[#allocation11 + $0x20] sm:$0xf]  ;;  %v1948_v36 = vld [vmem:[#allocation11 + $0x24] sm:$0xf0] }
 0x1a4   :  { %v950_v24 = vadd.f32 %v949_v22, %v948_v46  ;;  %v967_v25 = vrot.slane %v966_v23, 4  ;;  %v1972_v22 = vld [vmem:[#allocation11 + $0xe4] sm:$0xf0] }
 0x1a5   :  { %v931_v26 = vpop.f32.mrf.mxu2  ;;  %v944_v27 = vpop.f32.mrf.mxu3  ;;  %1258 = vmatpush.bf16.msrb.mxu0 %v1770_v19  ;;  %v1801_v19 = vld [vmem:[#allocation11 + $0xa0] sm:$0xf] }
 0x1a6   :  { %v951_v28 = vrot.slane %v950_v24, 2  ;;  %v968_v29 = vadd.f32 %v967_v25, %v966_v23  ;;  %v2264_v30 = vadd.f32 %v944_v27, %v931_v26  ;;  %v907_v32 = vpop.f32.mrf.mxu0  ;;  %v920_v33 = vpop.f32.mrf.mxu1  ;;  %v1955_v23 = vld [vmem:[#allocation11 + $0x64] sm:$0xf]  ;;  %v1834_v25 = vor.u32 %v1972_v22, %v1833_v49  ;;  %v1771_v26 = vld [vmem:[#allocation11 + $0x68] sm:$0xf0] }
 0x1a7   :  { %v1971_v27 = vld [vmem:[#allocation11 + $0xe4] sm:$0xf]  ;;  %v1774_v32 = vor.u32 %v1955_v23, %v1771_v26  ;;  %v1738_v49 = vor.u32 %v1948_v36, %v1737_v56  ;;  %v1964_v22 = vld [vmem:[#allocation11 + $0xa4] sm:$0xf0] }
 0x1a8   :  { %v952_v34 = vadd.f32 %v951_v28, %v950_v24  ;;  %v969_v35 = vrot.slane %v968_v29, 2  ;;  %v955_v37 = vsel %vm605_vm0, %v2264_v30, 0.0  ;;  %v965_v38 = vmul.f32 %v2264_v30, %v2264_v30  ;;  %v1835_v28 = vld [vmem:[#allocation11 + $0xe8] sm:$0xf0]  ;;  %1271 = vmatpush.bf16.msrb.mxu1 %v1834_v25  ;;  %v1947_v23 = vld [vmem:[#allocation11 + $0x24] sm:$0xf] }
 0x1a9   :  { %v956_v39 = vrot.slane %v955_v37, 4  ;;  %v1838_v33 = vor.u32 %v1971_v27, %v1835_v28  ;;  %1284 = vmatpush.bf16.msrb.mxu2 %v1774_v32  ;;  %v1802_v27 = vor.u32 %v1964_v22, %v1801_v19  ;;  %v1739_v28 = vld [vmem:[#allocation11 + $0x28] sm:$0xf0]  ;;  %v1085_v22 = vld [vmem:[%s2326_s5] sm:$0x3] }
 0x1aa   :  { %v953_v40 = vrot.slane %v952_v34, 1  ;;  %v970_v41 = vadd.f32 %v969_v35, %v968_v29  ;;  %v973_v42 = vsel %vm605_vm0, %v965_v38, 0.0  ;;  %v1954_v35 = vld [vmem:[#allocation11 + $0x54] sm:$0xf0]  ;;  %v1803_v32 = vld [vmem:[#allocation11 + $0xa8] sm:$0xf0] }
 0x1ab   :  { %v957_v43 = vadd.f32 %v956_v39, %v955_v37  ;;  %v974_v44 = vrot.slane %v973_v42, 4  ;;  %v1825_v39 = vld [vmem:[#allocation11 + $0xd0] sm:$0xf]  ;;  %1297 = vmatpush.bf16.msrb.mxu3 %v1838_v33  ;;  %v989_v33 = vld [vmem:[#allocation9 + $0x2] ss:$4 sm:$0x3] }
 0x1ac   :  { %v954_v45 = vadd.f32 %v953_v40, %v952_v34  ;;  %v971_v47 = vrot.slane %v970_v41, 1  ;;  %v1761_v34 = vld [vmem:[#allocation11 + $0x50] sm:$0xf]  ;;  %v1970_v40 = vld [vmem:[#allocation11 + $0xd4] sm:$0xf0] }
 0x1ad   :  { %v958_v48 = vrot.slane %v957_v43, 2  ;;  %v975_v50 = vadd.f32 %v974_v44, %v973_v42  ;;  %v933_v51 = vpop.f32.mrf.mxu2  ;;  %v946_v52 = vpop.f32.mrf.mxu3  ;;  %v1762_v38 = vor.u32 %v1954_v35, %v1761_v34  ;;  %v1826_v42 = vor.u32 %v1970_v40, %v1825_v39  ;;  %v1969_v44 = vld [vmem:[#allocation11 + $0xd4] sm:$0xf]  ;;  %v1793_v39 = vld [vmem:[#allocation11 + $0x90] sm:$0xf] }
 0x1ae   :  { %v2271_v53 = vmul.f32 0.5, %v954_v45  ;;  %v972_v54 = vadd.f32 %v971_v47, %v970_v41  ;;  %v1953_v41 = vld [vmem:[#allocation11 + $0x54] sm:$0xf]  ;;  %v1827_v45 = vld [vmem:[#allocation11 + $0xd8] sm:$0xf0]  ;;  %v1742_v34 = vor.u32 %v1947_v23, %v1739_v28  ;;  %v1087_v23 = vperm.slane %v1085_v22, 0 }
 0x1af   :  { %v959_v55 = vadd.f32 %v958_v48, %v957_v43  ;;  %v976_v58 = vrot.slane %v975_v50, 2  ;;  %v1763_v43 = vld [vmem:[#allocation11 + $0x58] sm:$0xf0]  ;;  %1259 = vmatpush.bf16.msrb.mxu0 %v1762_v38  ;;  %v1830_v48 = vor.u32 %v1969_v44, %v1827_v45  ;;  %1272 = vmatpush.bf16.msrb.mxu1 %v1826_v42  ;;  %v1952_v51 = vld [vmem:[#allocation11 + $0x44] sm:$0xf0] }
 0x1b0   :  { %v980_v59 = vmul.f32 0.5, %v972_v54  ;;  %v982_v60 = vmul.f32 %v2271_v53, %v2271_v53  ;;  %v1766_v47 = vor.u32 %v1953_v41, %v1763_v43  ;;  %v1817_v52 = vld [vmem:[#allocation11 + $0xc0] sm:$0xf]  ;;  %v1729_v38 = vld [vmem:[#allocation11 + $0x10] sm:$0xf] }
 0x1b1   :  { %v960_v61 = vrot.slane %v959_v55, 1  ;;  %v977_v0 = vadd.f32 %v976_v58, %v975_v50  ;;  %v1753_v50 = vld [vmem:[#allocation11 + $0x40] sm:$0xf]  ;;  %1298 = vmatpush.bf16.msrb.mxu3 %v1830_v48  ;;  %v1962_v42 = vld [vmem:[#allocation11 + $0x94] sm:$0xf0] }
 0x1b2   :  { %v984_v1 = vsub.f32 %v980_v59, %v982_v60  ;;  %v1754_v58 = vor.u32 %v1952_v51, %v1753_v50  ;;  %v1968_v59 = vld [vmem:[#allocation11 + $0xc4] sm:$0xf0]  ;;  %v1951_v60 = vld [vmem:[#allocation11 + $0x44] sm:$0xf]  ;;  %1285 = vmatpush.bf16.msrb.mxu2 %v1766_v47  ;;  %v1945_v43 = vld [vmem:[#allocation11 + $0x14] sm:$0xf]  ;;  %v1794_v45 = vor.u32 %v1962_v42, %v1793_v39 }
 0x1b3   :  { %v961_v2 = vadd.f32 %v960_v61, %v959_v55  ;;  %v978_v3 = vrot.slane %v977_v0, 1  ;;  %v1731_v47 = vld [vmem:[#allocation11 + $0x18] sm:$0xf0] }
 0x1b4   :  { %v986_v4 = vmax.f32 %v984_v1, 0.0  ;;  %v1755_v1 = vld [vmem:[#allocation11 + $0x48] sm:$0xf0]  ;;  %1260 = vmatpush.bf16.msrb.mxu0 %v1754_v58  ;;  %v1795_v48 = vld [vmem:[#allocation11 + $0x98] sm:$0xf0]  ;;  %v1734_v51 = vor.u32 %v1945_v43, %v1731_v47 }
 0x1b5   :  { %v2275_v5 = vmul.f32 0.5, %v961_v2  ;;  %v979_v6 = vadd.f32 %v978_v3, %v977_v0  ;;  %v1818_v0 = vor.u32 %v1968_v59, %v1817_v52  ;;  %v1967_v2 = vld [vmem:[#allocation11 + $0xc4] sm:$0xf]  ;;  %v1819_v3 = vld [vmem:[#allocation11 + $0xc8] sm:$0xf0] }
 0x1b6   :  { %v2277_v7 = vadd.f32 1e-05, %v986_v4  ;;  %v1758_v4 = vor.u32 %v1951_v60, %v1755_v1  ;;  %v1785_v58 = vld [vmem:[#allocation11 + $0x80] sm:$0xf] }
 0x1b7   :  { %v981_v8 = vmul.f32 0.5, %v979_v6  ;;  %v983_v31 = vmul.f32 %v2275_v5, %v2275_v5  ;;  %v1822_v6 = vor.u32 %v1967_v2, %v1819_v3  ;;  %1273 = vmatpush.bf16.msrb.mxu1 %v1818_v0  ;;  %v1943_v0 = vld [vmem:[#allocation11 + $0x4] sm:$0xf]  ;;  %v1787_v3 = vld [vmem:[#allocation11 + $0x88] sm:$0xf0] }
 0x1b8   :  { %1987 = vrsqrt.f32 %v2277_v7  ;;  %1286 = vmatpush.bf16.msrb.mxu2 %v1758_v4  ;;  %vm998_vm12 = vweird.f32 %v2277_v7  ;;  %v1959_v2 = vld [vmem:[#allocation11 + $0x84] sm:$0xf] }
 0x1b9   :  { %v985_v12 = vsub.f32 %v981_v8, %v983_v31  ;;  %v1745_v31 = vld [vmem:[#allocation11 + $0x30] sm:$0xf]  ;;  %1299 = vmatpush.bf16.msrb.mxu3 %v1822_v6 }
 0x1ba   :  { %v1746_v11 = vor.u32 %v1950_v9, %v1745_v31  ;;  %v1790_v31 = vor.u32 %v1959_v2, %v1787_v3 }
 0x1bb   :  { %v987_v62 = vmax.f32 %v985_v12, 0.0  ;;  %v1966_v12 = vld [vmem:[#allocation11 + $0xb4] sm:$0xf0] }
 0x1bc   :  { %v1810_v13 = vor.u32 %v1966_v12, %v1809_v10  ;;  %1261 = vmatpush.bf16.msrb.mxu0 %v1746_v11  ;;  %1287 = vmatpush.bf16.msrb.mxu2 %v1750_v18  ;;  %v1019_v10 = vld [vmem:[#allocation9 + $0x3] ss:$4 sm:$0x3] }
 0x1bd   :  { %v2282_v46 = vadd.f32 1e-05, %v987_v62  ;;  %v1814_v62 = vor.u32 %v1965_v20, %v1811_v21 }
 0x1be   :  { %v2284_v24 = vpop.eup %1987  ;;  %1274 = vmatpush.bf16.msrb.mxu1 %v1810_v13 }
 0x1bf   :  { %v993_v29 = vmul.f32 %v2284_v24, %v2277_v7  ;;  %1989 = vrsqrt.f32 %v2282_v46  ;;  %vm999_vm9 = vweird.f32 %v2284_v24  ;;  %vm1008_vm10 = vweird.f32 %v2282_v46  ;;  %1300 = vmatpush.bf16.msrb.mxu3 %v1814_v62  ;;  %v1961_v7 = vld [vmem:[#allocation11 + $0x94] sm:$0xf] }
 0x1c0   :  { %1262 = vmatpush.bf16.msrb.mxu0 %v1738_v49  ;;  %vm1000_vm13 = vmor %vm998_vm12, %vm999_vm9  ;;  %1288 = vmatpush.bf16.msrb.mxu2 %v1742_v34  ;;  %v1798_v52 = vor.u32 %v1961_v7, %v1795_v48 }
 0x1c1   :  { %v994_v37 = vmul.f32 %v2284_v24, %v993_v29  ;;  %v1963_v29 = vld [vmem:[#allocation11 + $0xa4] sm:$0xf] }
 0x1c2   :  { %v1806_v35 = vor.u32 %v1963_v29, %v1803_v32  ;;  %1275 = vmatpush.bf16.msrb.mxu1 %v1802_v27 }
 0x1c3   :  { %v995_v55 = vmul.f32 0.5, %v994_v37 }
 0x1c4   :  { %1301 = vmatpush.bf16.msrb.mxu3 %v1806_v35  ;;  %1289 = vmatpush.bf16.msrb.mxu2 %v1734_v51 }
 0x1c5   :  { %v2290_v54 = vpop.eup %1989  ;;  %v996_v16 = vsub.f32 1.5, %v995_v55  ;;  %v1944_v55 = vld [vmem:[#allocation11 + $0x4] sm:$0xf0] }
 0x1c6   :  { %v1003_v61 = vmul.f32 %v2290_v54, %v2282_v46  ;;  %vm1009_vm8 = vweird.f32 %v2290_v54  ;;  %v1946_v46 = vld [vmem:[#allocation11 + $0x14] sm:$0xf0]  ;;  %1276 = vmatpush.bf16.msrb.mxu1 %v1794_v45 }
 0x1c7   :  { %v997_v25 = vmul.f32 %v2284_v24, %v996_v16  ;;  %vm1010_vm11 = vmor %vm1008_vm10, %vm1009_vm8  ;;  %v1730_v41 = vor.u32 %v1946_v46, %v1729_v38 }
 0x1c8   :  { %v1004_v8 = vmul.f32 %v2290_v54, %v1003_v61  ;;  %v1960_v61 = vld [vmem:[#allocation11 + $0x84] sm:$0xf0]  ;;  %1302 = vmatpush.bf16.msrb.mxu3 %v1798_v52 }
 0x1c9   :  { %v1001_v44 = vsel %vm1000_vm13, %v2284_v24, %v997_v25  ;;  %1263 = vmatpush.bf16.msrb.mxu0 %v1730_v41  ;;  %v1723_v24 = vld [vmem:[#allocation11 + $0x8] sm:$0xf0]  ;;  %v1786_v1 = vor.u32 %v1960_v61, %v1785_v58  ;;  %v1088_v25 = vperm.slane %v1085_v22, 1 }
 0x1ca   :  { %v1005_v17 = vmul.f32 0.5, %v1004_v8  ;;  %v1726_v8 = vor.u32 %v1943_v0, %v1723_v24 }
 0x1cb   :  { %1277 = vmatpush.bf16.msrb.mxu1 %v1786_v1 }
 0x1cc   :  { %v1006_v63 = vsub.f32 1.5, %v1005_v17  ;;  %1290 = vmatpush.bf16.msrb.mxu2 %v1726_v8  ;;  %1303 = vmatpush.bf16.msrb.mxu3 %v1790_v31 }
 0x1ce   :  { %v1007_v26 = vmul.f32 %v2290_v54, %v1006_v63 }
 0x1d0   :  { %v1011_v37 = vsel %vm1010_vm11, %v2290_v54, %v1007_v26  ;;  %v1721_v54 = vld [vmem:[#allocation11] sm:$0xf] }
 0x1d1   :  { %v1014_v40 = vrot.slane %v1011_v37, 7  ;;  %v1722_v60 = vor.u32 %v1944_v55, %v1721_v54 }
 0x1d3   :  { %v1015_v50 = vsel %vm672_vm6, %v1001_v44, %v1014_v40  ;;  %1264 = vmatpush.bf16.msrb.mxu0 %v1722_v60 }
 0x1d4   :  { %v1017_v59 = vmul.f32 %v1015_v50, %v989_v33 }
 0x1d6   :  { %v1021_v4 = vperm.slane %v1017_v59, 0  ;;  %v1022_v6 = vperm.slane %v1017_v59, 1 }
 0x1d8   :  { %v1026_v9 = vmul.f32 %v1022_v6, %v2275_v5  ;;  %v1025_v11 = vmul.f32 %v1021_v4, %v2271_v53  ;;  %v1033_v16 = vmul.f32 %v1021_v4, %v2257_v57  ;;  %v1034_v17 = vmul.f32 %v1022_v6, %v2264_v30 }
 0x1da   :  { %v1029_v12 = vrot.slane %v1026_v9, 7 }
 0x1dc   :  { %v1030_v14 = vsel %vm672_vm6, %v1025_v11, %v1029_v12 }
 0x1dd   :  { %v1032_v15 = vsub.f32 %v1019_v10, %v1030_v14 }
 0x1df   :  { %v1036_v13 = vperm.slane %v1032_v15, 0  ;;  %v1037_v18 = vperm.slane %v1032_v15, 1 }
 0x1e1   :  { %v1040_v20 = vadd.f32 %v1036_v13, %v1033_v16  ;;  %v1041_v21 = vadd.f32 %v1037_v18, %v1034_v17 }
 0x1e3   :  { %v1042_v62 = vmax.f32 %v1040_v20, 0.0  ;;  %v1043_v5 = vmax.f32 %v1041_v21, 0.0 }
 0x1e5   :  { %v1044_v63 = vpack.c.bf16 %v1043_v5, %v1042_v62 }
 0x1e7   :  { %v1046_v56 = vrot.slane %v1044_v63, 3 }
 0x1e9   :  { %v1049_v53 = vsel %vm672_vm6, %v1044_v63, %v1046_v56 }
 0x1ea   :  { %1051 = vst [vmem:[#allocation2] sm:$0x3] %v1049_v53 }
 0x1f1   :  { %v1052_v36 = vld [vmem:[#allocation2] sm:$0x3] }
 0x1f2   :  { %1092 = vst [vmem:[#allocation1] ss:$9 sm:$0xff] %v1052_v36 }
 0x1f9   :  { %v1093_v49 = vld [vmem:[#allocation1] sm:$0xff]  ;;  %v1094_v19 = vld [vmem:[#allocation1 + $0x9] sm:$0xff] }
 0x1fa   :  { %1265 = vmatmul.bf16.vlgmr.msrb.gmra.mxu0 %v1093_v49  ;;  %1278 = vmatmul.bf16.vlgmr.msrb.gmra.mxu1 %v1094_v19 }
 0x1fb   :  { %1291 = vmatmul.bf16.vlgmr.msrb.gmra.mxu2 %v1093_v49  ;;  %1304 = vmatmul.bf16.vlgmr.msrb.gmra.mxu3 %v1094_v19 }
 0x277   :  { %v1266_v57 = vpop.f32.mrf.mxu0  ;;  %v1279_v30 = vpop.f32.mrf.mxu1 }
 0x278   :  { %v1267_v28 = vadd.f32 %v1266_v57, %v1087_v23 }
 0x27a   :  { %v1280_v35 = vadd.f32 %v1279_v30, %v1267_v28 }
 0x27e   :  { %v1292_v26 = vpop.f32.mrf.mxu2  ;;  %v1305_v27 = vpop.f32.mrf.mxu3 }
 0x27f   :  { %v1293_v29 = vadd.f32 %v1292_v26, %v1088_v25  ;;  %v1268_v32 = vpop.f32.mrf.mxu0  ;;  %v1281_v33 = vpop.f32.mrf.mxu1 }
 0x281   :  { %v1306_v34 = vadd.f32 %v1305_v27, %v1293_v29 }
 0x283   :  { %v1311_v37 = vrot.slane %v1306_v34, 6 }
 0x285   :  { %v1313_v38 = vsel %vm605_vm0, %v1280_v35, %v1311_v37 }
 0x286   :  { %v1294_v46 = vpop.f32.mrf.mxu2  ;;  %v1307_v39 = vpop.f32.mrf.mxu3  ;;  %1315 = vst [vmem:[#allocation12] sm:$0xf] %v1313_v38 }
 0x287   :  { %1326 = dma.vmem_to_hbm [thread:$0]  %s1322_s22, 64, %s1324_s25, [#allocation5]  }
 0x288   :  { %2141 = dma.done.wait [#allocation5], 64  }
 0x289   :  { %2142 = vsyncadd [#allocation5], 4294967232 }
 0x28a   :  { %1331 = vsyncpa [#allocation4], 1 }
 0x28b   :  { %1332 = vsyncpa [#allocation7], 1 }
 0x28c   :  { %1333 = vsyncpa [#allocation10], 1 }
 0x28d   :  { %1334 = vsyncpa [#allocation5], 1 }

</bundles_post_ra>
